<compile_context>
chip_gen: v6e
topology: v6e:2x2x1
jax: 0.10.0
libtpu: 0.0.40
codegen_flags: <defaults>
</compile_context>

<pallas_src>
import jax
import jax.numpy as jnp
from jax.experimental import pallas as pl
from jax.experimental.pallas import tpu as pltpu

BN_EPS = 1e-5


# ----------------------------- Pallas kernel --------------------------------

def tgnn_kernel(a_ref, x_ref, wg_ref, wl_ref, v_ref, out_ref):
    f32, bf16 = jnp.float32, jnp.bfloat16
    h = wg_ref.shape[1]                      # dim_h (static)

    a = a_ref[...]                           # (BN, BN) f32 block-diagonal A_hat
    x = x_ref[...]                           # (BN, h)  f32, zero-padded past dim_in
    xb = x.astype(bf16)

    def vec(i):                              # (1, h) f32 parameter row
        return v_ref[i:i + 1, 0:h]

    # ---- GCNConv1 -> relu -> folded BatchNorm (eval) ----
    xw1 = jnp.dot(xb, wg_ref[0], preferred_element_type=f32)         # (BN, h)
    h1 = jnp.dot(a, xw1, preferred_element_type=f32) + vec(0)        # f32 aggregation
    h1 = jnp.maximum(h1, 0.0) * vec(1) + vec(2)                      # folded BN1
    h1b = h1.astype(bf16)

    # ---- GCNConv2 -> relu -> folded BatchNorm (eval) ----
    hw2 = jnp.dot(h1b, wg_ref[1], preferred_element_type=f32)
    h2 = jnp.dot(a, hw2, preferred_element_type=f32) + vec(3)
    h2 = jnp.maximum(h2, 0.0) * vec(4) + vec(5)                      # folded BN2
    h2b = h2.astype(bf16)

    # ---- LSTM single steps, h0=c0=0, forget gate elided (c0=0) ----
    # Fused gate tiles, lane layout [i | g | o | pad] (each h wide, padded to 128).
    def lstm_combine(g):                     # g: (BN, GATE_W) f32
        i_s = jax.nn.sigmoid(g[:, 0:h])
        g_t = jnp.tanh(g[:, h:2 * h])
        o_s = jax.nn.sigmoid(g[:, 2 * h:3 * h])
        return o_s * jnp.tanh(i_s * g_t)     # (BN, h) f32

    g1 = (jnp.dot(h1b, wl_ref[0], preferred_element_type=f32)
          + jnp.dot(h2b, wl_ref[1], preferred_element_type=f32)
          + v_ref[6:7, :])                   # (BN, GATE_W)
    hh1 = lstm_combine(g1)
    hh1b = hh1.astype(bf16)

    g2 = jnp.dot(hh1b, wl_ref[2], preferred_element_type=f32) + v_ref[7:8, :]
    hh2 = lstm_combine(g2)

    # ---- Final Linear(2h+F -> 1) as VPU multiply + lane reduce, then tanh ----
    total = (jnp.maximum(hh1, 0.0) * vec(8)
             + jnp.maximum(hh2, 0.0) * vec(9)
             + jnp.maximum(x, 0.0) * vec(10))                        # (BN, h)
    s = jnp.sum(total, axis=1, keepdims=True) + v_ref[11:12, 0:1]    # (BN, 1)
    out_ref[...] = jnp.tanh(s)


# ----------------------------- wrapper ---------------------------------------

@jax.jit
def temporal_gnn_forward(a_hat, x, wgcn, wlstm, vecs):
    """a_hat: (B, N, N) f32 normalized adjacencies; x: (B, N, dim_in) f32."""
    B, N, _ = a_hat.shape
    dim_in = x.shape[-1]
    h = wgcn.shape[1]
    gate_w = wlstm.shape[2]
    assert dim_in <= h, "x zero-padding assumes dim_in <= dim_h"
    BN = B * N

    # Block-diagonal adjacency: graphs never mix, so one big matmul handles all B.
    eye_b = jnp.eye(B, dtype=a_hat.dtype)
    a_blk = jnp.einsum('bc,bij->bicj', eye_b, a_hat).reshape(BN, BN)
    x_pad = jnp.pad(x.reshape(BN, dim_in), ((0, 0), (0, h - dim_in)))

    flops = 2 * BN * (2 * h * h + 2 * BN * h + 3 * h * gate_w) + 12 * BN * h
    bytes_accessed = (a_blk.size * 4 + x_pad.size * 4 + wgcn.size * 2
                      + wlstm.size * 2 + vecs.size * 4 + BN * 4)

    vmem = pl.BlockSpec(memory_space=pltpu.MemorySpace.VMEM)
    out = pl.pallas_call(
        tgnn_kernel,
        out_shape=jax.ShapeDtypeStruct((BN, 1), jnp.float32),
        in_specs=[vmem, vmem, vmem, vmem, vmem],
        out_specs=vmem,
        cost_estimate=pl.CostEstimate(flops=int(flops),
                                      transcendentals=int(10 * BN * h),
                                      bytes_accessed=int(bytes_accessed)),
    )(a_blk, x_pad, wgcn, wlstm, vecs)
    return out.reshape(B, N, 1)


# ----------------------------- JAX glue --------------------------------------

def gcn_norm_dense(edge_index, edge_weight, num_nodes):
    """Dense D^{-1/2}(A + I)D^{-1/2}, matching PyG GCNConv(add_self_loops=True)."""
    src, dst = edge_index[0], edge_index[1]
    loop = jnp.arange(num_nodes, dtype=src.dtype)
    src = jnp.concatenate([src, loop])
    dst = jnp.concatenate([dst, loop])
    w = jnp.concatenate([edge_weight, jnp.ones((num_nodes,), edge_weight.dtype)])
    deg = jnp.zeros((num_nodes,), w.dtype).at[dst].add(w)
    dinv = jnp.where(deg > 0, 1.0 / jnp.sqrt(deg), 0.0)
    norm = dinv[src] * w * dinv[dst]
    return jnp.zeros((num_nodes, num_nodes), w.dtype).at[dst, src].add(norm)


def init_params(key, dim_in, dim_h):
    """PyTorch-layout parameters (weights transposed to (in, out))."""
    ks = jax.random.split(key, 12)

    def uni(k, fan_in, shape):
        bound = 1.0 / jnp.sqrt(jnp.float32(fan_in))
        return jax.random.uniform(k, shape, jnp.float32, -bound, bound)

    w1 = uni(ks[0], dim_in, (dim_in, dim_h))
    b1 = uni(ks[1], dim_in, (dim_h,))
    w2 = uni(ks[2], dim_h, (dim_h, dim_h))
    b2 = uni(ks[3], dim_h, (dim_h,))
    # BatchNorm1d default: gamma=1, beta=0, running_mean=0, running_var=1
    bn1 = jnp.stack([jnp.ones(dim_h), jnp.zeros(dim_h),
                     jnp.zeros(dim_h), jnp.ones(dim_h)]).astype(jnp.float32)
    bn2 = bn1
    # LSTM gate order along 4h: i, f, g, o
    wih1 = uni(ks[4], dim_h, (2 * dim_h, 4 * dim_h))
    bih1 = uni(ks[5], dim_h, (4 * dim_h,))
    bhh1 = uni(ks[6], dim_h, (4 * dim_h,))
    wih2 = uni(ks[7], dim_h, (dim_h, 4 * dim_h))
    bih2 = uni(ks[8], dim_h, (4 * dim_h,))
    bhh2 = uni(ks[9], dim_h, (4 * dim_h,))
    wl = uni(ks[10], 2 * dim_h + dim_in, (2 * dim_h + dim_in, 1))
    blin = uni(ks[11], 2 * dim_h + dim_in, (1,))
    return (w1, b1, bn1, w2, b2, bn2,
            wih1, bih1, bhh1, wih2, bih2, bhh2, wl, blin)


def pack_params(params, gate_w=128):
    """Pack into GCN slab (2,h,h) bf16, fused LSTM slab (3,h,gate_w) bf16,
    and one f32 vector block (12, gate_w)."""
    (w1, b1, bn1, w2, b2, bn2,
     wih1, bih1, bhh1, wih2, bih2, bhh2, wl, blin) = params
    dim_in, h = w1.shape
    assert 3 * h <= gate_w, "fused gate block must fit [i|g|o] within gate_w lanes"

    # --- GCN weights (W1 row-padded to (h,h)) ---
    w1_pad = jnp.zeros((h, h), jnp.float32).at[:dim_in, :].set(w1)
    wgcn = jnp.stack([w1_pad, w2]).astype(jnp.bfloat16)

    # --- fused LSTM weights: keep gates i, g, o (forget dropped: c0 = 0, single step) ---
    def fuse_igo(w):              # (in, 4h) -> (in, gate_w) laid out [i | g | o | 0]
        out = jnp.zeros((w.shape[0], gate_w), jnp.float32)
        out = out.at[:, 0:h].set(w[:, 0:h])             # i
        out = out.at[:, h:2 * h].set(w[:, 2 * h:3 * h]) # g
        out = out.at[:, 2 * h:3 * h].set(w[:, 3 * h:])  # o
        return out

    wa, wb = wih1[:h], wih1[h:]
    wlstm = jnp.stack([fuse_igo(wa), fuse_igo(wb), fuse_igo(wih2)]
                      ).astype(jnp.bfloat16)

    # --- vector block ---
    def fuse_igo_b(b):            # (4h,) -> (gate_w,)
        out = jnp.zeros((gate_w,), jnp.float32)
        out = out.at[0:h].set(b[0:h])
        out = out.at[h:2 * h].set(b[2 * h:3 * h])
        out = out.at[2 * h:3 * h].set(b[3 * h:])
        return out

    def bn_fold(bn):
        scale = bn[0] / jnp.sqrt(bn[3] + BN_EPS)
        return scale, bn[1] - bn[2] * scale

    def row(v):                   # width-<=gate_w vector -> zero-padded gate_w row
        return jnp.zeros((gate_w,), jnp.float32).at[:v.shape[0]].set(v)

    s1, t1 = bn_fold(bn1)
    s2, t2 = bn_fold(bn2)
    bl1 = fuse_igo_b(bih1 + bhh1)     # h0 = 0, so W_hh contributes only its bias
    bl2 = fuse_igo_b(bih2 + bhh2)
    wlh1, wlh2, wlx = wl[:h, 0], wl[h:2 * h, 0], wl[2 * h:, 0]
    blin_row = jnp.zeros((gate_w,), jnp.float32).at[0].set(blin[0])

    vecs = jnp.stack([row(b1), row(s1), row(t1), row(b2), row(s2), row(t2),
                      bl1, bl2, row(wlh1), row(wlh2), row(wlx), blin_row]
                     ).astype(jnp.float32)
    return wgcn, wlstm, vecs


def reference_forward(a, x, params):
    """Pure-JAX f32 reference (single graph) using PyTorch-layout parameters."""
    (w1, b1, bn1, w2, b2, bn2,
     wih1, bih1, bhh1, wih2, bih2, bhh2, wl, blin) = params
    hd = w1.shape[1]

    def bn(z, p):
        return (z - p[2]) / jnp.sqrt(p[3] + BN_EPS) * p[0] + p[1]

    h1 = bn(jnp.maximum(a @ (x @ w1) + b1, 0.0), bn1)
    h2 = bn(jnp.maximum(a @ (h1 @ w2) + b2, 0.0), bn2)

    def lstm_step(inp, wih, bias):   # single step, h0 = c0 = 0
        g = inp @ wih + bias
        i = jax.nn.sigmoid(g[:, :hd])
        gg = jnp.tanh(g[:, 2 * hd:3 * hd])
        o = jax.nn.sigmoid(g[:, 3 * hd:])
        return o * jnp.tanh(i * gg)

    hh1 = lstm_step(jnp.concatenate([h1, h2], axis=1), wih1, bih1 + bhh1)
    hh2 = lstm_step(hh1, wih2, bih2 + bhh2)
    H = jnp.concatenate([hh1, hh2, x], axis=1)
    return jnp.tanh(jnp.maximum(H, 0.0) @ wl + blin)


if __name__ == "__main__":
    batch, num_nodes, dim_in, dim_h = 8, 16, 4, 32

    key = jax.random.PRNGKey(0)
    k_x, k_w, k_p = jax.random.split(key, 3)

    # B graphs sharing a deterministic ring topology, with per-graph edge weights
    # and node features.
    x = jax.random.normal(k_x, (batch, num_nodes, dim_in), jnp.float32)
    src = jnp.arange(num_nodes, dtype=jnp.int32)
    dst = (src + 1) % num_nodes
    edge_index = jnp.stack([jnp.concatenate([src, dst]),
                            jnp.concatenate([dst, src])])
    edge_weight = jax.random.uniform(k_w, (batch, edge_index.shape[1]),
                                     jnp.float32, 0.5, 1.5)
    a_hat = jax.vmap(gcn_norm_dense, in_axes=(None, 0, None))(
        edge_index, edge_weight, num_nodes)                    # (B, N, N)

    params = init_params(k_p, dim_in, dim_h)
    wgcn, wlstm, vecs = pack_params(params)

    out = jax.block_until_ready(temporal_gnn_forward(a_hat, x, wgcn, wlstm, vecs))
    ref = jax.vmap(lambda a, xi: reference_forward(a, xi, params))(a_hat, x)

    assert out.shape == (batch, num_nodes, 1)
    # bf16 weight-side MXU operands (f32 accumulate, f32 A_hat) vs f32 reference.
    err = float(jnp.max(jnp.abs(out - ref)))
    assert err < 2e-2, f"mismatch vs reference: max abs err = {err}"

    print("KERNEL_OK")
</pallas_src>

<mosaic_0001>
module attributes {stable_mosaic.version = 11 : i64} {
  func.func @tgnn_kernel(%arg0: memref<128x128xf32, #tpu.memory_space<vmem>>, %arg1: memref<128x32xf32, #tpu.memory_space<vmem>>, %arg2: memref<2x32x32xbf16, #tpu.memory_space<vmem>>, %arg3: memref<3x32x128xbf16, #tpu.memory_space<vmem>>, %arg4: memref<12x128xf32, #tpu.memory_space<vmem>>, %arg5: memref<128x1xf32, #tpu.memory_space<vmem>>) attributes {dimension_semantics = [], scalar_prefetch = 0 : i64, scratch_operands = 0 : i64, tpu.core_type = #tpu.core_type<tc>} {
    %c0 = arith.constant 0 : index
    %c0_0 = arith.constant 0 : index
    %0 = vector.load %arg0[%c0, %c0_0] : memref<128x128xf32, #tpu.memory_space<vmem>>, vector<128x128xf32>
    %c0_1 = arith.constant 0 : index
    %c0_2 = arith.constant 0 : index
    %1 = vector.load %arg1[%c0_1, %c0_2] : memref<128x32xf32, #tpu.memory_space<vmem>>, vector<128x32xf32>
    %2 = arith.truncf %1 : vector<128x32xf32> to vector<128x32xbf16>
    %c0_3 = arith.constant 0 : index
    %c0_4 = arith.constant 0 : index
    %c0_5 = arith.constant 0 : index
    %3 = vector.load %arg2[%c0_3, %c0_4, %c0_5] : memref<2x32x32xbf16, #tpu.memory_space<vmem>>, vector<1x32x32xbf16>
    %4 = vector.shape_cast %3 : vector<1x32x32xbf16> to vector<32x32xbf16>
    %cst = arith.constant dense<0.000000e+00> : vector<128x32xf32>
    %5 = tpu.matmul %2, %4, %cst {dimension_numbers = #tpu.dot_dimension_numbers<[1], [0], [0], [1], [0, 0, 1, 1], [], []>} : vector<128x32xbf16>, vector<32x32xbf16>, vector<128x32xf32> -> vector<128x32xf32>
    %cst_6 = arith.constant dense<0.000000e+00> : vector<128x32xf32>
    %6 = tpu.matmul %0, %5, %cst_6 {dimension_numbers = #tpu.dot_dimension_numbers<[1], [0], [0], [1], [0, 0, 1, 1], [], []>} : vector<128x128xf32>, vector<128x32xf32>, vector<128x32xf32> -> vector<128x32xf32>
    %c0_7 = arith.constant 0 : index
    %c0_8 = arith.constant 0 : index
    %7 = vector.load %arg4[%c0_7, %c0_8] : memref<12x128xf32, #tpu.memory_space<vmem>>, vector<1x32xf32>
    %8 = vector.broadcast %7 : vector<1x32xf32> to vector<128x32xf32>
    %9 = arith.addf %6, %8 : vector<128x32xf32>
    %cst_9 = arith.constant 0.000000e+00 : f32
    %10 = vector.broadcast %cst_9 : f32 to vector<128x32xf32>
    %11 = arith.maximumf %9, %10 : vector<128x32xf32>
    %c1 = arith.constant 1 : index
    %c0_10 = arith.constant 0 : index
    %12 = vector.load %arg4[%c1, %c0_10] : memref<12x128xf32, #tpu.memory_space<vmem>>, vector<1x32xf32>
    %13 = vector.broadcast %12 : vector<1x32xf32> to vector<128x32xf32>
    %14 = arith.mulf %11, %13 : vector<128x32xf32>
    %c2 = arith.constant 2 : index
    %c0_11 = arith.constant 0 : index
    %15 = vector.load %arg4[%c2, %c0_11] : memref<12x128xf32, #tpu.memory_space<vmem>>, vector<1x32xf32>
    %16 = vector.broadcast %15 : vector<1x32xf32> to vector<128x32xf32>
    %17 = arith.addf %14, %16 : vector<128x32xf32>
    %18 = arith.truncf %17 : vector<128x32xf32> to vector<128x32xbf16>
    %c1_12 = arith.constant 1 : index
    %c0_13 = arith.constant 0 : index
    %c0_14 = arith.constant 0 : index
    %19 = vector.load %arg2[%c1_12, %c0_13, %c0_14] : memref<2x32x32xbf16, #tpu.memory_space<vmem>>, vector<1x32x32xbf16>
    %20 = vector.shape_cast %19 : vector<1x32x32xbf16> to vector<32x32xbf16>
    %cst_15 = arith.constant dense<0.000000e+00> : vector<128x32xf32>
    %21 = tpu.matmul %18, %20, %cst_15 {dimension_numbers = #tpu.dot_dimension_numbers<[1], [0], [0], [1], [0, 0, 1, 1], [], []>} : vector<128x32xbf16>, vector<32x32xbf16>, vector<128x32xf32> -> vector<128x32xf32>
    %cst_16 = arith.constant dense<0.000000e+00> : vector<128x32xf32>
    %22 = tpu.matmul %0, %21, %cst_16 {dimension_numbers = #tpu.dot_dimension_numbers<[1], [0], [0], [1], [0, 0, 1, 1], [], []>} : vector<128x128xf32>, vector<128x32xf32>, vector<128x32xf32> -> vector<128x32xf32>
    %c3 = arith.constant 3 : index
    %c0_17 = arith.constant 0 : index
    %23 = vector.load %arg4[%c3, %c0_17] : memref<12x128xf32, #tpu.memory_space<vmem>>, vector<1x32xf32>
    %24 = vector.broadcast %23 : vector<1x32xf32> to vector<128x32xf32>
    %25 = arith.addf %22, %24 : vector<128x32xf32>
    %cst_18 = arith.constant 0.000000e+00 : f32
    %26 = vector.broadcast %cst_18 : f32 to vector<128x32xf32>
    %27 = arith.maximumf %25, %26 : vector<128x32xf32>
    %c4 = arith.constant 4 : index
    %c0_19 = arith.constant 0 : index
    %28 = vector.load %arg4[%c4, %c0_19] : memref<12x128xf32, #tpu.memory_space<vmem>>, vector<1x32xf32>
    %29 = vector.broadcast %28 : vector<1x32xf32> to vector<128x32xf32>
    %30 = arith.mulf %27, %29 : vector<128x32xf32>
    %c5 = arith.constant 5 : index
    %c0_20 = arith.constant 0 : index
    %31 = vector.load %arg4[%c5, %c0_20] : memref<12x128xf32, #tpu.memory_space<vmem>>, vector<1x32xf32>
    %32 = vector.broadcast %31 : vector<1x32xf32> to vector<128x32xf32>
    %33 = arith.addf %30, %32 : vector<128x32xf32>
    %34 = arith.truncf %33 : vector<128x32xf32> to vector<128x32xbf16>
    %c0_21 = arith.constant 0 : index
    %c0_22 = arith.constant 0 : index
    %c0_23 = arith.constant 0 : index
    %35 = vector.load %arg3[%c0_21, %c0_22, %c0_23] : memref<3x32x128xbf16, #tpu.memory_space<vmem>>, vector<1x32x128xbf16>
    %36 = vector.shape_cast %35 : vector<1x32x128xbf16> to vector<32x128xbf16>
    %cst_24 = arith.constant dense<0.000000e+00> : vector<128x128xf32>
    %37 = tpu.matmul %18, %36, %cst_24 {dimension_numbers = #tpu.dot_dimension_numbers<[1], [0], [0], [1], [0, 0, 1, 1], [], []>} : vector<128x32xbf16>, vector<32x128xbf16>, vector<128x128xf32> -> vector<128x128xf32>
    %c1_25 = arith.constant 1 : index
    %c0_26 = arith.constant 0 : index
    %c0_27 = arith.constant 0 : index
    %38 = vector.load %arg3[%c1_25, %c0_26, %c0_27] : memref<3x32x128xbf16, #tpu.memory_space<vmem>>, vector<1x32x128xbf16>
    %39 = vector.shape_cast %38 : vector<1x32x128xbf16> to vector<32x128xbf16>
    %cst_28 = arith.constant dense<0.000000e+00> : vector<128x128xf32>
    %40 = tpu.matmul %34, %39, %cst_28 {dimension_numbers = #tpu.dot_dimension_numbers<[1], [0], [0], [1], [0, 0, 1, 1], [], []>} : vector<128x32xbf16>, vector<32x128xbf16>, vector<128x128xf32> -> vector<128x128xf32>
    %41 = arith.addf %37, %40 : vector<128x128xf32>
    %c6 = arith.constant 6 : index
    %c0_29 = arith.constant 0 : index
    %42 = vector.load %arg4[%c6, %c0_29] : memref<12x128xf32, #tpu.memory_space<vmem>>, vector<1x128xf32>
    %43 = vector.broadcast %42 : vector<1x128xf32> to vector<128x128xf32>
    %44 = arith.addf %41, %43 : vector<128x128xf32>
    %45 = vector.extract_strided_slice %44 {offsets = [0, 0], sizes = [128, 32], strides = [1, 1]} : vector<128x128xf32> to vector<128x32xf32>
    %46 = arith.negf %45 : vector<128x32xf32>
    %47 = math.exp %46 : vector<128x32xf32>
    %cst_30 = arith.constant 1.000000e+00 : f32
    %48 = vector.broadcast %cst_30 : f32 to vector<128x32xf32>
    %49 = arith.addf %48, %47 : vector<128x32xf32>
    %50 = arith.divf %48, %49 : vector<128x32xf32>
    %51 = vector.extract_strided_slice %44 {offsets = [0, 32], sizes = [128, 32], strides = [1, 1]} : vector<128x128xf32> to vector<128x32xf32>
    %52 = math.tanh %51 : vector<128x32xf32>
    %53 = vector.extract_strided_slice %44 {offsets = [0, 64], sizes = [128, 32], strides = [1, 1]} : vector<128x128xf32> to vector<128x32xf32>
    %54 = arith.negf %53 : vector<128x32xf32>
    %55 = math.exp %54 : vector<128x32xf32>
    %cst_31 = arith.constant 1.000000e+00 : f32
    %56 = vector.broadcast %cst_31 : f32 to vector<128x32xf32>
    %57 = arith.addf %56, %55 : vector<128x32xf32>
    %58 = arith.divf %56, %57 : vector<128x32xf32>
    %59 = arith.mulf %50, %52 : vector<128x32xf32>
    %60 = math.tanh %59 : vector<128x32xf32>
    %61 = arith.mulf %58, %60 : vector<128x32xf32>
    %62 = arith.truncf %61 : vector<128x32xf32> to vector<128x32xbf16>
    %c2_32 = arith.constant 2 : index
    %c0_33 = arith.constant 0 : index
    %c0_34 = arith.constant 0 : index
    %63 = vector.load %arg3[%c2_32, %c0_33, %c0_34] : memref<3x32x128xbf16, #tpu.memory_space<vmem>>, vector<1x32x128xbf16>
    %64 = vector.shape_cast %63 : vector<1x32x128xbf16> to vector<32x128xbf16>
    %cst_35 = arith.constant dense<0.000000e+00> : vector<128x128xf32>
    %65 = tpu.matmul %62, %64, %cst_35 {dimension_numbers = #tpu.dot_dimension_numbers<[1], [0], [0], [1], [0, 0, 1, 1], [], []>} : vector<128x32xbf16>, vector<32x128xbf16>, vector<128x128xf32> -> vector<128x128xf32>
    %c7 = arith.constant 7 : index
    %c0_36 = arith.constant 0 : index
    %66 = vector.load %arg4[%c7, %c0_36] : memref<12x128xf32, #tpu.memory_space<vmem>>, vector<1x128xf32>
    %67 = vector.broadcast %66 : vector<1x128xf32> to vector<128x128xf32>
    %68 = arith.addf %65, %67 : vector<128x128xf32>
    %69 = vector.extract_strided_slice %68 {offsets = [0, 0], sizes = [128, 32], strides = [1, 1]} : vector<128x128xf32> to vector<128x32xf32>
    %70 = arith.negf %69 : vector<128x32xf32>
    %71 = math.exp %70 : vector<128x32xf32>
    %cst_37 = arith.constant 1.000000e+00 : f32
    %72 = vector.broadcast %cst_37 : f32 to vector<128x32xf32>
    %73 = arith.addf %72, %71 : vector<128x32xf32>
    %74 = arith.divf %72, %73 : vector<128x32xf32>
    %75 = vector.extract_strided_slice %68 {offsets = [0, 32], sizes = [128, 32], strides = [1, 1]} : vector<128x128xf32> to vector<128x32xf32>
    %76 = math.tanh %75 : vector<128x32xf32>
    %77 = vector.extract_strided_slice %68 {offsets = [0, 64], sizes = [128, 32], strides = [1, 1]} : vector<128x128xf32> to vector<128x32xf32>
    %78 = arith.negf %77 : vector<128x32xf32>
    %79 = math.exp %78 : vector<128x32xf32>
    %cst_38 = arith.constant 1.000000e+00 : f32
    %80 = vector.broadcast %cst_38 : f32 to vector<128x32xf32>
    %81 = arith.addf %80, %79 : vector<128x32xf32>
    %82 = arith.divf %80, %81 : vector<128x32xf32>
    %83 = arith.mulf %74, %76 : vector<128x32xf32>
    %84 = math.tanh %83 : vector<128x32xf32>
    %85 = arith.mulf %82, %84 : vector<128x32xf32>
    %cst_39 = arith.constant 0.000000e+00 : f32
    %86 = vector.broadcast %cst_39 : f32 to vector<128x32xf32>
    %87 = arith.maximumf %61, %86 : vector<128x32xf32>
    %c8 = arith.constant 8 : index
    %c0_40 = arith.constant 0 : index
    %88 = vector.load %arg4[%c8, %c0_40] : memref<12x128xf32, #tpu.memory_space<vmem>>, vector<1x32xf32>
    %89 = vector.broadcast %88 : vector<1x32xf32> to vector<128x32xf32>
    %90 = arith.mulf %87, %89 : vector<128x32xf32>
    %cst_41 = arith.constant 0.000000e+00 : f32
    %91 = vector.broadcast %cst_41 : f32 to vector<128x32xf32>
    %92 = arith.maximumf %85, %91 : vector<128x32xf32>
    %c9 = arith.constant 9 : index
    %c0_42 = arith.constant 0 : index
    %93 = vector.load %arg4[%c9, %c0_42] : memref<12x128xf32, #tpu.memory_space<vmem>>, vector<1x32xf32>
    %94 = vector.broadcast %93 : vector<1x32xf32> to vector<128x32xf32>
    %95 = arith.mulf %92, %94 : vector<128x32xf32>
    %96 = arith.addf %90, %95 : vector<128x32xf32>
    %cst_43 = arith.constant 0.000000e+00 : f32
    %97 = vector.broadcast %cst_43 : f32 to vector<128x32xf32>
    %98 = arith.maximumf %1, %97 : vector<128x32xf32>
    %c10 = arith.constant 10 : index
    %c0_44 = arith.constant 0 : index
    %99 = vector.load %arg4[%c10, %c0_44] : memref<12x128xf32, #tpu.memory_space<vmem>>, vector<1x32xf32>
    %100 = vector.broadcast %99 : vector<1x32xf32> to vector<128x32xf32>
    %101 = arith.mulf %98, %100 : vector<128x32xf32>
    %102 = arith.addf %96, %101 : vector<128x32xf32>
    %cst_45 = arith.constant dense<0.000000e+00> : vector<128xf32>
    %103 = vector.multi_reduction <add>, %102, %cst_45 [1] : vector<128x32xf32> to vector<128xf32>
    %104 = vector.shape_cast %103 : vector<128xf32> to vector<128x1xf32>
    %c11 = arith.constant 11 : index
    %c0_46 = arith.constant 0 : index
    %105 = vector.load %arg4[%c11, %c0_46] : memref<12x128xf32, #tpu.memory_space<vmem>>, vector<1x1xf32>
    %106 = vector.broadcast %105 : vector<1x1xf32> to vector<128x1xf32>
    %107 = arith.addf %104, %106 : vector<128x1xf32>
    %108 = math.tanh %107 : vector<128x1xf32>
    %c0_47 = arith.constant 0 : index
    %c0_48 = arith.constant 0 : index
    %109 = vector.load %arg5[%c0_47, %c0_48] : memref<128x1xf32, #tpu.memory_space<vmem>>, vector<128x1xf32>
    tpu.vector_store %arg5[%c0_47, %c0_48], %108 {strides = array<i32>} : memref<128x1xf32, #tpu.memory_space<vmem>>, vector<128x1xf32>,
    return
  }
}

</mosaic_0001>

<bundles_post_ra>
// kernel: temporal_gnn_forward.1
= control target key start
LH: loop header
LB: loop body
LE: loop exit
PB: predicated region body
PF: predicated region fallthrough
CT: control target
= control target key end

     0   :  { %vm77_vm0 = vcmask 261120   ;;  %s2925_s10 = smov 96   ;;  %s2926_s11 = smov 64   ;;  %vm2156_vm1 = vcmask 7168   ;;  %s4067_s2 = inlined_call_operand.vmem [shape: bf16[2,32,32], index: 2, kind: input, shape index: {}]   ;;  %s4068_s1 = inlined_call_operand.vmem [shape: f32[128,32], index: 1, kind: input, shape index: {}]   ;;  %s4069_s0 = inlined_call_operand.vmem [shape: f32[128,128], index: 0, kind: input, shape index: {}]   ;;  %s4070_s4 = inlined_call_operand.vmem [shape: f32[12,128], index: 4, kind: input, shape index: {}]   ;;  %s4071_s3 = inlined_call_operand.vmem [shape: bf16[3,32,128], index: 3, kind: input, shape index: {}]   ;;  %s4072_s5 = inlined_call_operand.vmem [shape: f32[128,1], index: 5, kind: output, shape index: {}]  }
   0x1   :  { %v2611_v0 = vld [vmem:[%s4067_s2 + $0x8] sm:$0xff]   ;;  %v2612_v1 = vld [vmem:[%s4067_s2] sm:$0xff]   ;;  %v39_v5 = vld [vmem:[%s4068_s1 + $0x10] sm:$0xff] }
   0x2   :  { %2397 = vmatprep.subr.bf16.mxu0 %v2611_v0  ;;  %v37_v2 = vld [vmem:[%s4068_s1] sm:$0xff]  ;;  %v38_v3 = vld [vmem:[%s4068_s1 + $0x8] sm:$0xff]  ;;  %v40_v6 = vld [vmem:[%s4068_s1 + $0x18] sm:$0xff] }
   0x3   :  { %2398 = vmatpush3.bf16.msra.mxu0 %v2611_v0  ;;  %v53_v4 = vpack.c.bf16 %v38_v3, %v37_v2  ;;  %v41_v7 = vld [vmem:[%s4068_s1 + $0x20] sm:$0xff]  ;;  %v42_v8 = vld [vmem:[%s4068_s1 + $0x28] sm:$0xff]  ;;  %v54_v9 = vpack.c.bf16 %v40_v6, %v39_v5  ;;  %v43_v11 = vld [vmem:[%s4068_s1 + $0x30] sm:$0xff] }
   0x4   :  { %2399 = vmatprep.subr.bf16.mxu0 %v2612_v1  ;;  %v55_v10 = vpack.c.bf16 %v42_v8, %v41_v7  ;;  %v44_v12 = vld [vmem:[%s4068_s1 + $0x38] sm:$0xff]  ;;  %v45_v13 = vld [vmem:[%s4068_s1 + $0x40] sm:$0xff]  ;;  %v46_v14 = vld [vmem:[%s4068_s1 + $0x48] sm:$0xff] }
   0x5   :  { %2401 = vmatprep.mubr.msk.bf16.mxu0 %vm77_vm0, %v53_v4  ;;  %v56_v15 = vpack.c.bf16 %v44_v12, %v43_v11  ;;  %v57_v16 = vpack.c.bf16 %v46_v14, %v45_v13  ;;  %v47_v17 = vld [vmem:[%s4068_s1 + $0x50] sm:$0xff]  ;;  %v48_v18 = vld [vmem:[%s4068_s1 + $0x58] sm:$0xff]  ;;  %v49_v19 = vld [vmem:[%s4068_s1 + $0x60] sm:$0xff] }
   0x6   :  { %v50_v20 = vld [vmem:[%s4068_s1 + $0x68] sm:$0xff]  ;;  %v58_v21 = vpack.c.bf16 %v48_v18, %v47_v17  ;;  %v51_v23 = vld [vmem:[%s4068_s1 + $0x70] sm:$0xff]  ;;  %v52_v24 = vld [vmem:[%s4068_s1 + $0x78] sm:$0xff] }
   0x7   :  { %2400 = vmatpush3.bf16.msra.mxu0 %v2612_v1  ;;  %v59_v22 = vpack.c.bf16 %v50_v20, %v49_v19  ;;  %v60_v25 = vpack.c.bf16 %v52_v24, %v51_v23  ;;  %v3022_v26 = vld [vmem:[%s4069_s0] sm:$0xff]  ;;  %v2613_v27 = vld [vmem:[%s4067_s2 + $0x18] sm:$0xff]   ;;  %v3031_v44 = vld [vmem:[%s4069_s0 + $0x8] sm:$0xff] }
   0x8   :  { %2449 = vmatprep.mubr.f32.mxu1 %v3022_v26  ;;  %2473 = vmatprep.subr.bf16.mxu0 %v2613_v27  ;;  %v3036_v45 = vld [vmem:[%s4069_s0 + $0x10] sm:$0xff]  ;;  %v3043_v46 = vld [vmem:[%s4069_s0 + $0x18] sm:$0xff]  ;;  %v3048_v47 = vld [vmem:[%s4069_s0 + $0x20] sm:$0xff] }
   0x9   :  { %v3055_v48 = vld [vmem:[%s4069_s0 + $0x28] sm:$0xff]  ;;  %v3060_v49 = vld [vmem:[%s4069_s0 + $0x30] sm:$0xff]  ;;  %v3067_v50 = vld [vmem:[%s4069_s0 + $0x38] sm:$0xff] }
   0xa   :  { %2402 = vmatmul.mubr.msk.bf16.vlgmr.msra.gmra.mxu0 %vm77_vm0, %v54_v9  ;;  %v3072_v51 = vld [vmem:[%s4069_s0 + $0x40] sm:$0xff]  ;;  %v3079_v52 = vld [vmem:[%s4069_s0 + $0x48] sm:$0xff]  ;;  %v3084_v53 = vld [vmem:[%s4069_s0 + $0x50] sm:$0xff] }
   0xb   :  { %2405 = vmatprep.mubr.msk.bf16.mxu0 %vm77_vm0, %v55_v10  ;;  %2474 = vmatpush3.bf16.msra.mxu0 %v2613_v27  ;;  %v3091_v54 = vld [vmem:[%s4069_s0 + $0x58] sm:$0xff]  ;;  %v3096_v55 = vld [vmem:[%s4069_s0 + $0x60] sm:$0xff]  ;;  %v3103_v56 = vld [vmem:[%s4069_s0 + $0x68] sm:$0xff] }
   0xc   :  { %v3108_v57 = vld [vmem:[%s4069_s0 + $0x70] sm:$0xff]  ;;  %v3115_v58 = vld [vmem:[%s4069_s0 + $0x78] sm:$0xff]  ;;  %v3125_v60 = vld [vmem:[%s4070_s4] ss:$0 sm:$0xff] }
   0xd   :  { %v2614_v59 = vld [vmem:[%s4067_s2 + $0x10] sm:$0xff]   ;;  %v3131_v63 = vld [vmem:[%s4070_s4 + $0x1] ss:$0 sm:$0xff]  ;;  %v3138_v5 = vld [vmem:[%s4070_s4 + $0x2] ss:$0 sm:$0xff] }
   0xe   :  { %2475 = vmatprep.subr.bf16.mxu0 %v2614_v59 }
   0xf   :  { %2476 = vmatpush3.bf16.msra.mxu0 %v2614_v59 }
  0x12   :  { %2406 = vmatmul.mubr.msk.bf16.gmra.mxu0 %vm77_vm0, %v56_v15 }
  0x13   :  { %2409 = vmatprep.mubr.msk.bf16.mxu0 %vm77_vm0, %v57_v16 }
  0x1a   :  { %2410 = vmatmul.mubr.msk.bf16.gmra.mxu0 %vm77_vm0, %v58_v21 }
  0x1b   :  { %2413 = vmatprep.mubr.msk.bf16.mxu0 %vm77_vm0, %v59_v22 }
  0x22   :  { %2414 = vmatmul.mubr.msk.bf16.gmra.mxu0 %vm77_vm0, %v60_v25 }
  0xca   :  { %v2403_v28 = vpop.f32.mrf.mxu0 }
  0xcc   :  { %v136_v29 = vpop.f32.mrf.mxu0 }
  0xce   :  { %v2404_v30 = vpop.f32.mrf.mxu0 }
  0xd0   :  { %v139_v31 = vpop.f32.mrf.mxu0 }
  0xd2   :  { %v2407_v32 = vpop.f32.mrf.mxu0 }
  0xd4   :  { %v152_v33 = vpop.f32.mrf.mxu0 }
  0xd6   :  { %v2408_v34 = vpop.f32.mrf.mxu0 }
  0xd8   :  { %v155_v35 = vpop.f32.mrf.mxu0 }
  0xda   :  { %v2411_v36 = vpop.f32.mrf.mxu0 }
  0xdc   :  { %v168_v37 = vpop.f32.mrf.mxu0 }
  0xde   :  { %v2412_v38 = vpop.f32.mrf.mxu0 }
  0xe0   :  { %v171_v39 = vpop.f32.mrf.mxu0 }
  0xe2   :  { %v2415_v40 = vpop.f32.mrf.mxu0 }
  0xe4   :  { %v184_v41 = vpop.f32.mrf.mxu0 }
  0xe6   :  { %v2416_v42 = vpop.f32.mrf.mxu0 }
  0xe7   :  { %2417 = vmatprep.subr.mxu1 %v2416_v42 }
  0xe8   :  { %2418 = vmatpush3.msra.mxu1 %v2416_v42  ;;  %v187_v43 = vpop.f32.mrf.mxu0 }
  0xe9   :  { %2419 = vmatprep.subr.mxu1 %v2415_v40 }
  0xea   :  { %2420 = vmatpush3.msra.mxu1 %v2415_v40 }
  0xeb   :  { %2421 = vmatprep.subr.mxu1 %v187_v43 }
  0xec   :  { %2422 = vmatpush3.msra.mxu1 %v187_v43 }
  0xed   :  { %2423 = vmatprep.subr.mxu1 %v184_v41 }
  0xee   :  { %2424 = vmatpush3.msra.mxu1 %v184_v41 }
  0xef   :  { %2425 = vmatprep.subr.mxu1 %v2412_v38 }
  0xf0   :  { %2426 = vmatpush3.msra.mxu1 %v2412_v38 }
  0xf1   :  { %2427 = vmatprep.subr.mxu1 %v2411_v36 }
  0xf2   :  { %2428 = vmatpush3.msra.mxu1 %v2411_v36 }
  0xf3   :  { %2429 = vmatprep.subr.mxu1 %v171_v39 }
  0xf4   :  { %2430 = vmatpush3.msra.mxu1 %v171_v39 }
  0xf5   :  { %2431 = vmatprep.subr.mxu1 %v168_v37 }
  0xf6   :  { %2432 = vmatpush3.msra.mxu1 %v168_v37 }
  0xf7   :  { %2433 = vmatprep.subr.mxu1 %v2408_v34 }
  0xf8   :  { %2434 = vmatpush3.msra.mxu1 %v2408_v34 }
  0xf9   :  { %2435 = vmatprep.subr.mxu1 %v2407_v32 }
  0xfa   :  { %2436 = vmatpush3.msra.mxu1 %v2407_v32 }
  0xfb   :  { %2437 = vmatprep.subr.mxu1 %v155_v35 }
  0xfc   :  { %2438 = vmatpush3.msra.mxu1 %v155_v35 }
  0xfd   :  { %2439 = vmatprep.subr.mxu1 %v152_v33 }
  0xfe   :  { %2440 = vmatpush3.msra.mxu1 %v152_v33 }
  0xff   :  { %2441 = vmatprep.subr.mxu1 %v2404_v30 }
 0x100   :  { %2442 = vmatpush3.msra.mxu1 %v2404_v30 }
 0x101   :  { %2443 = vmatprep.subr.mxu1 %v2403_v28 }
 0x102   :  { %2444 = vmatpush3.msra.mxu1 %v2403_v28 }
 0x103   :  { %2445 = vmatprep.subr.mxu1 %v139_v31 }
 0x104   :  { %2446 = vmatpush3.msra.mxu1 %v139_v31 }
 0x105   :  { %2447 = vmatprep.subr.mxu1 %v136_v29 }
 0x106   :  { %2448 = vmatpush3.msra.mxu1 %v136_v29 }
 0x107   :  { %2450 = vmatmul.mubr.f32.vlgmr.msra.gmra.mxu1 %v3031_v44 }
 0x108   :  { %2452 = vmatprep.mubr.f32.mxu1 %v3036_v45 }
 0x10b   :  { %2453 = vmatmul.mubr.f32.gmra.mxu1 %v3043_v46 }
 0x10c   :  { %2455 = vmatprep.mubr.f32.mxu1 %v3048_v47 }
 0x10f   :  { %2456 = vmatmul.mubr.f32.gmra.mxu1 %v3055_v48 }
 0x110   :  { %2458 = vmatprep.mubr.f32.mxu1 %v3060_v49 }
 0x113   :  { %2459 = vmatmul.mubr.f32.gmra.mxu1 %v3067_v50 }
 0x114   :  { %2461 = vmatprep.mubr.f32.mxu1 %v3072_v51 }
 0x117   :  { %2462 = vmatmul.mubr.f32.gmra.mxu1 %v3079_v52 }
 0x118   :  { %2464 = vmatprep.mubr.f32.mxu1 %v3084_v53 }
 0x11b   :  { %2465 = vmatmul.mubr.f32.gmra.mxu1 %v3091_v54 }
 0x11c   :  { %2467 = vmatprep.mubr.f32.mxu1 %v3096_v55 }
 0x11f   :  { %2468 = vmatmul.mubr.f32.gmra.mxu1 %v3103_v56 }
 0x120   :  { %2470 = vmatprep.mubr.f32.mxu1 %v3108_v57 }
 0x123   :  { %2471 = vmatmul.mubr.f32.gmra.mxu1 %v3115_v58 }
 0x124   :  { %2525 = vmatprep.mubr.f32.mxu1 %v3022_v26 }
 0x1c7   :  { %v2451_v61 = vpop.f32.mrf.mxu1 }
 0x1c8   :  { %v276_v62 = vadd.f32 %v2451_v61, %v3125_v60 }
 0x1c9   :  { %v270_v0 = vpop.f32.mrf.mxu1 }
 0x1ca   :  { %v350_v1 = vmax.f32 %v276_v62, 0.0  ;;  %v271_v2 = vadd.f32 %v3125_v60, %v270_v0 }
 0x1cb   :  { %v2454_v3 = vpop.f32.mrf.mxu1 }
 0x1cc   :  { %v371_v4 = vmul.f32 %v3131_v63, %v350_v1  ;;  %v349_v6 = vmax.f32 %v271_v2, 0.0  ;;  %v286_v7 = vadd.f32 %v2454_v3, %v3125_v60 }
 0x1cd   :  { %v280_v8 = vpop.f32.mrf.mxu1 }
 0x1ce   :  { %v370_v9 = vmul.f32 %v3131_v63, %v349_v6  ;;  %v352_v10 = vmax.f32 %v286_v7, 0.0  ;;  %v281_v11 = vadd.f32 %v3125_v60, %v280_v8  ;;  %v392_v12 = vadd.f32 %v3138_v5, %v371_v4 }
 0x1cf   :  { %v2457_v13 = vpop.f32.mrf.mxu1 }
 0x1d0   :  { %v391_v14 = vadd.f32 %v3138_v5, %v370_v9  ;;  %v373_v15 = vmul.f32 %v3131_v63, %v352_v10  ;;  %v351_v16 = vmax.f32 %v281_v11, 0.0  ;;  %v296_v17 = vadd.f32 %v2457_v13, %v3125_v60 }
 0x1d1   :  { %v290_v18 = vpop.f32.mrf.mxu1 }
 0x1d2   :  { %v3147_v19 = vpack.c.bf16 %v392_v12, %v391_v14  ;;  %v372_v20 = vmul.f32 %v3131_v63, %v351_v16  ;;  %v354_v21 = vmax.f32 %v296_v17, 0.0  ;;  %v291_v22 = vadd.f32 %v3125_v60, %v290_v18 }
 0x1d3   :  { %v2460_v23 = vpop.f32.mrf.mxu1  ;;  %v394_v24 = vadd.f32 %v3138_v5, %v373_v15 }
 0x1d4   :  { %v393_v25 = vadd.f32 %v3138_v5, %v372_v20  ;;  %v306_v26 = vadd.f32 %v2460_v23, %v3125_v60  ;;  %2477 = vmatprep.mubr.msk.bf16.mxu0 %vm77_vm0, %v3147_v19  ;;  %v375_v27 = vmul.f32 %v3131_v63, %v354_v21  ;;  %v353_v28 = vmax.f32 %v291_v22, 0.0 }
 0x1d5   :  { %v300_v29 = vpop.f32.mrf.mxu1 }
 0x1d6   :  { %v3157_v30 = vpack.c.bf16 %v394_v24, %v393_v25  ;;  %v356_v31 = vmax.f32 %v306_v26, 0.0  ;;  %v301_v32 = vadd.f32 %v3125_v60, %v300_v29  ;;  %v374_v33 = vmul.f32 %v3131_v63, %v353_v28 }
 0x1d7   :  { %v2463_v34 = vpop.f32.mrf.mxu1  ;;  %v396_v38 = vadd.f32 %v3138_v5, %v375_v27 }
 0x1d8   :  { %v377_v35 = vmul.f32 %v3131_v63, %v356_v31  ;;  %v355_v36 = vmax.f32 %v301_v32, 0.0  ;;  %v316_v37 = vadd.f32 %v2463_v34, %v3125_v60  ;;  %2478 = vmatmul.mubr.msk.bf16.vlgmr.msra.gmra.mxu0 %vm77_vm0, %v3157_v30  ;;  %v395_v39 = vadd.f32 %v3138_v5, %v374_v33 }
 0x1d9   :  { %v310_v40 = vpop.f32.mrf.mxu1 }
 0x1da   :  { %v376_v41 = vmul.f32 %v3131_v63, %v355_v36  ;;  %v358_v42 = vmax.f32 %v316_v37, 0.0  ;;  %v311_v43 = vadd.f32 %v3125_v60, %v310_v40  ;;  %v3169_v59 = vpack.c.bf16 %v396_v38, %v395_v39 }
 0x1db   :  { %v398_v61 = vadd.f32 %v3138_v5, %v377_v35  ;;  %v2466_v62 = vpop.f32.mrf.mxu1 }
 0x1dc   :  { %v397_v0 = vadd.f32 %v3138_v5, %v376_v41  ;;  %v379_v1 = vmul.f32 %v3131_v63, %v358_v42  ;;  %v357_v2 = vmax.f32 %v311_v43, 0.0  ;;  %v326_v3 = vadd.f32 %v2466_v62, %v3125_v60  ;;  %2481 = vmatprep.mubr.msk.bf16.mxu0 %vm77_vm0, %v3169_v59  ;;  %v2617_v42 = vld [vmem:[%s4071_s3 + $0x18] sm:$0xff]  }
 0x1dd   :  { %v320_v4 = vpop.f32.mrf.mxu1  ;;  %2549 = vmatprep.subr.bf16.mxu0 %v2617_v42 }
 0x1de   :  { %v3177_v6 = vpack.c.bf16 %v398_v61, %v397_v0  ;;  %v378_v7 = vmul.f32 %v3131_v63, %v357_v2  ;;  %v360_v8 = vmax.f32 %v326_v3, 0.0  ;;  %v321_v9 = vadd.f32 %v3125_v60, %v320_v4  ;;  %2550 = vmatpush3.bf16.msra.mxu0 %v2617_v42 }
 0x1df   :  { %v2469_v10 = vpop.f32.mrf.mxu1  ;;  %v400_v11 = vadd.f32 %v3138_v5, %v379_v1 }
 0x1e0   :  { %v399_v12 = vadd.f32 %v3138_v5, %v378_v7  ;;  %v336_v13 = vadd.f32 %v2469_v10, %v3125_v60  ;;  %2482 = vmatmul.mubr.msk.bf16.gmra.mxu0 %vm77_vm0, %v3177_v6  ;;  %v381_v14 = vmul.f32 %v3131_v63, %v360_v8  ;;  %v359_v15 = vmax.f32 %v321_v9, 0.0 }
 0x1e1   :  { %v330_v16 = vpop.f32.mrf.mxu1 }
 0x1e2   :  { %v3187_v17 = vpack.c.bf16 %v400_v11, %v399_v12  ;;  %v362_v18 = vmax.f32 %v336_v13, 0.0  ;;  %v331_v20 = vadd.f32 %v3125_v60, %v330_v16  ;;  %v380_v21 = vmul.f32 %v3131_v63, %v359_v15  ;;  %v2615_v13 = vld [vmem:[%s4071_s3 + $0x8] sm:$0xff]  }
 0x1e3   :  { %v2472_v22 = vpop.f32.mrf.mxu1  ;;  %v402_v26 = vadd.f32 %v3138_v5, %v381_v14  ;;  %v2616_v14 = vld [vmem:[%s4071_s3] sm:$0xff]  }
 0x1e4   :  { %v383_v23 = vmul.f32 %v3131_v63, %v362_v18  ;;  %v361_v24 = vmax.f32 %v331_v20, 0.0  ;;  %v346_v25 = vadd.f32 %v2472_v22, %v3125_v60  ;;  %2485 = vmatprep.mubr.msk.bf16.mxu0 %vm77_vm0, %v3187_v17  ;;  %v401_v27 = vadd.f32 %v3138_v5, %v380_v21 }
 0x1e5   :  { %v340_v28 = vpop.f32.mrf.mxu1 }
 0x1e6   :  { %v382_v29 = vmul.f32 %v3131_v63, %v361_v24  ;;  %v364_v31 = vmax.f32 %v346_v25, 0.0  ;;  %v341_v32 = vadd.f32 %v3125_v60, %v340_v28  ;;  %v3199_v33 = vpack.c.bf16 %v402_v26, %v401_v27 }
 0x1e7   :  { %v404_v34 = vadd.f32 %v3138_v5, %v383_v23 }
 0x1e8   :  { %v403_v35 = vadd.f32 %v3138_v5, %v382_v29  ;;  %v385_v36 = vmul.f32 %v3131_v63, %v364_v31  ;;  %v363_v37 = vmax.f32 %v341_v32, 0.0  ;;  %2486 = vmatmul.mubr.msk.bf16.gmra.mxu0 %vm77_vm0, %v3199_v33 }
 0x1ea   :  { %v3206_v38 = vpack.c.bf16 %v404_v34, %v403_v35  ;;  %v384_v39 = vmul.f32 %v3131_v63, %v363_v37  ;;  %v406_v40 = vadd.f32 %v3138_v5, %v385_v36 }
 0x1ec   :  { %v405_v60 = vadd.f32 %v3138_v5, %v384_v39  ;;  %2489 = vmatprep.mubr.msk.bf16.mxu0 %vm77_vm0, %v3206_v38 }
 0x1ee   :  { %v3213_v41 = vpack.c.bf16 %v406_v40, %v405_v60 }
 0x1f0   :  { %2490 = vmatmul.mubr.msk.bf16.gmra.mxu0 %vm77_vm0, %v3213_v41 }
 0x298   :  { %v2479_v43 = vpop.f32.mrf.mxu0 }
 0x29a   :  { %v490_v63 = vpop.f32.mrf.mxu0 }
 0x29c   :  { %v2480_v61 = vpop.f32.mrf.mxu0 }
 0x29e   :  { %v493_v62 = vpop.f32.mrf.mxu0 }
 0x2a0   :  { %v2483_v0 = vpop.f32.mrf.mxu0 }
 0x2a2   :  { %v506_v5 = vpop.f32.mrf.mxu0 }
 0x2a4   :  { %v2484_v1 = vpop.f32.mrf.mxu0 }
 0x2a6   :  { %v509_v2 = vpop.f32.mrf.mxu0 }
 0x2a8   :  { %v2487_v3 = vpop.f32.mrf.mxu0 }
 0x2aa   :  { %v522_v4 = vpop.f32.mrf.mxu0 }
 0x2ac   :  { %v2488_v7 = vpop.f32.mrf.mxu0 }
 0x2ae   :  { %v525_v8 = vpop.f32.mrf.mxu0 }
 0x2b0   :  { %v2491_v9 = vpop.f32.mrf.mxu0 }
 0x2b2   :  { %v538_v10 = vpop.f32.mrf.mxu0 }
 0x2b4   :  { %v2492_v11 = vpop.f32.mrf.mxu0 }
 0x2b5   :  { %2493 = vmatprep.subr.mxu1 %v2492_v11 }
 0x2b6   :  { %2494 = vmatpush3.msra.mxu1 %v2492_v11  ;;  %v541_v12 = vpop.f32.mrf.mxu0 }
 0x2b7   :  { %2495 = vmatprep.subr.mxu1 %v2491_v9 }
 0x2b8   :  { %2496 = vmatpush3.msra.mxu1 %v2491_v9 }
 0x2b9   :  { %2497 = vmatprep.subr.mxu1 %v541_v12 }
 0x2ba   :  { %2498 = vmatpush3.msra.mxu1 %v541_v12 }
 0x2bb   :  { %2499 = vmatprep.subr.mxu1 %v538_v10 }
 0x2bc   :  { %2500 = vmatpush3.msra.mxu1 %v538_v10 }
 0x2bd   :  { %2501 = vmatprep.subr.mxu1 %v2488_v7 }
 0x2be   :  { %2502 = vmatpush3.msra.mxu1 %v2488_v7 }
 0x2bf   :  { %2503 = vmatprep.subr.mxu1 %v2487_v3 }
 0x2c0   :  { %2504 = vmatpush3.msra.mxu1 %v2487_v3 }
 0x2c1   :  { %2505 = vmatprep.subr.mxu1 %v525_v8 }
 0x2c2   :  { %2506 = vmatpush3.msra.mxu1 %v525_v8 }
 0x2c3   :  { %2507 = vmatprep.subr.mxu1 %v522_v4 }
 0x2c4   :  { %2508 = vmatpush3.msra.mxu1 %v522_v4 }
 0x2c5   :  { %2509 = vmatprep.subr.mxu1 %v2484_v1 }
 0x2c6   :  { %2510 = vmatpush3.msra.mxu1 %v2484_v1 }
 0x2c7   :  { %2511 = vmatprep.subr.mxu1 %v2483_v0 }
 0x2c8   :  { %2512 = vmatpush3.msra.mxu1 %v2483_v0 }
 0x2c9   :  { %2513 = vmatprep.subr.mxu1 %v509_v2 }
 0x2ca   :  { %2514 = vmatpush3.msra.mxu1 %v509_v2 }
 0x2cb   :  { %2515 = vmatprep.subr.mxu1 %v506_v5 }
 0x2cc   :  { %2516 = vmatpush3.msra.mxu1 %v506_v5 }
 0x2cd   :  { %2517 = vmatprep.subr.mxu1 %v2480_v61 }
 0x2ce   :  { %2518 = vmatpush3.msra.mxu1 %v2480_v61 }
 0x2cf   :  { %2519 = vmatprep.subr.mxu1 %v2479_v43 }
 0x2d0   :  { %2520 = vmatpush3.msra.mxu1 %v2479_v43 }
 0x2d1   :  { %2521 = vmatprep.subr.mxu1 %v493_v62 }
 0x2d2   :  { %2522 = vmatpush3.msra.mxu1 %v493_v62 }
 0x2d3   :  { %2523 = vmatprep.subr.mxu1 %v490_v63 }
 0x2d4   :  { %2524 = vmatpush3.msra.mxu1 %v490_v63 }
 0x2d5   :  { %2526 = vmatmul.mubr.f32.vlgmr.msra.gmra.mxu1 %v3031_v44  ;;  %2569 = vmatprep.subr.bf16.mxu1 %v2615_v13  ;;  %v2618_v44 = vld [vmem:[%s4071_s3 + $0x10] sm:$0xff]  }
 0x2d6   :  { %2528 = vmatprep.mubr.f32.mxu1 %v3036_v45  ;;  %2570 = vmatpush3.bf16.msra.mxu1 %v2615_v13  ;;  %v3263_v45 = vld [vmem:[%s4070_s4 + $0x3] ss:$0 sm:$0xff] }
 0x2d7   :  { %2571 = vmatprep.subr.bf16.mxu1 %v2616_v14  ;;  %2551 = vmatprep.subr.bf16.mxu0 %v2618_v44 }
 0x2d8   :  { %2552 = vmatpush3.bf16.msra.mxu0 %v2618_v44 }
 0x2d9   :  { %2529 = vmatmul.mubr.f32.gmra.mxu1 %v3043_v46 }
 0x2da   :  { %2531 = vmatprep.mubr.f32.mxu1 %v3048_v47  ;;  %2572 = vmatpush3.bf16.msra.mxu1 %v2616_v14 }
 0x2dd   :  { %2532 = vmatmul.mubr.f32.gmra.mxu1 %v3055_v48  ;;  %v3269_v48 = vld [vmem:[%s4070_s4 + $0x4] ss:$0 sm:$0xff] }
 0x2de   :  { %2534 = vmatprep.mubr.f32.mxu1 %v3060_v49 }
 0x2e1   :  { %2535 = vmatmul.mubr.f32.gmra.mxu1 %v3067_v50 }
 0x2e2   :  { %2537 = vmatprep.mubr.f32.mxu1 %v3072_v51 }
 0x2e5   :  { %2538 = vmatmul.mubr.f32.gmra.mxu1 %v3079_v52 }
 0x2e6   :  { %2540 = vmatprep.mubr.f32.mxu1 %v3084_v53 }
 0x2e9   :  { %2541 = vmatmul.mubr.f32.gmra.mxu1 %v3091_v54  ;;  %v3276_v54 = vld [vmem:[%s4070_s4 + $0x5] ss:$0 sm:$0xff] }
 0x2ea   :  { %2543 = vmatprep.mubr.f32.mxu1 %v3096_v55 }
 0x2ed   :  { %2544 = vmatmul.mubr.f32.gmra.mxu1 %v3103_v56 }
 0x2ee   :  { %2546 = vmatprep.mubr.f32.mxu1 %v3108_v57 }
 0x2f1   :  { %2547 = vmatmul.mubr.f32.gmra.mxu1 %v3115_v58 }
 0x2f2   :  { %2573 = vmatprep.mubr.msk.bf16.mxu1 %vm77_vm0, %v3147_v19 }
 0x2f5   :  { %2574 = vmatmul.mubr.msk.bf16.vlgmr.msra.gmra.mxu1 %vm77_vm0, %v3157_v30 }
 0x2f6   :  { %2577 = vmatprep.mubr.msk.bf16.mxu1 %vm77_vm0, %v3169_v59 }
 0x2fd   :  { %2578 = vmatmul.mubr.msk.bf16.gmra.mxu1 %vm77_vm0, %v3177_v6 }
 0x2fe   :  { %2581 = vmatprep.mubr.msk.bf16.mxu1 %vm77_vm0, %v3187_v17 }
 0x305   :  { %2582 = vmatmul.mubr.msk.bf16.gmra.mxu1 %vm77_vm0, %v3199_v33 }
 0x306   :  { %2585 = vmatprep.mubr.msk.bf16.mxu1 %vm77_vm0, %v3206_v38 }
 0x30d   :  { %2586 = vmatmul.mubr.msk.bf16.gmra.mxu1 %vm77_vm0, %v3213_v41 }
 0x395   :  { %v2527_v46 = vpop.f32.mrf.mxu1 }
 0x396   :  { %v630_v47 = vadd.f32 %v2527_v46, %v3263_v45 }
 0x397   :  { %v624_v49 = vpop.f32.mrf.mxu1 }
 0x398   :  { %v704_v50 = vmax.f32 %v630_v47, 0.0  ;;  %v625_v51 = vadd.f32 %v3263_v45, %v624_v49 }
 0x399   :  { %v2530_v52 = vpop.f32.mrf.mxu1 }
 0x39a   :  { %v725_v53 = vmul.f32 %v3269_v48, %v704_v50  ;;  %v703_v55 = vmax.f32 %v625_v51, 0.0  ;;  %v640_v56 = vadd.f32 %v2530_v52, %v3263_v45 }
 0x39b   :  { %v634_v57 = vpop.f32.mrf.mxu1 }
 0x39c   :  { %v724_v58 = vmul.f32 %v3269_v48, %v703_v55  ;;  %v706_v19 = vmax.f32 %v640_v56, 0.0  ;;  %v635_v30 = vadd.f32 %v3263_v45, %v634_v57  ;;  %v746_v59 = vadd.f32 %v3276_v54, %v725_v53 }
 0x39d   :  { %v2533_v6 = vpop.f32.mrf.mxu1 }
 0x39e   :  { %v745_v15 = vadd.f32 %v3276_v54, %v724_v58  ;;  %v727_v16 = vmul.f32 %v3269_v48, %v706_v19  ;;  %v705_v17 = vmax.f32 %v635_v30, 0.0  ;;  %v650_v18 = vadd.f32 %v2533_v6, %v3263_v45 }
 0x39f   :  { %v644_v20 = vpop.f32.mrf.mxu1 }
 0x3a0   :  { %v761_v21 = vpack.c.bf16 %v746_v59, %v745_v15  ;;  %v726_v22 = vmul.f32 %v3269_v48, %v705_v17  ;;  %v708_v23 = vmax.f32 %v650_v18, 0.0  ;;  %v645_v24 = vadd.f32 %v3263_v45, %v644_v20 }
 0x3a1   :  { %v2536_v25 = vpop.f32.mrf.mxu1  ;;  %v748_v26 = vadd.f32 %v3276_v54, %v727_v16 }
 0x3a2   :  { %v747_v27 = vadd.f32 %v3276_v54, %v726_v22  ;;  %v660_v28 = vadd.f32 %v2536_v25, %v3263_v45  ;;  %2553 = vmatprep.mubr.msk.bf16.mxu0 %vm77_vm0, %v761_v21  ;;  %v729_v29 = vmul.f32 %v3269_v48, %v708_v23  ;;  %v707_v31 = vmax.f32 %v645_v24, 0.0 }
 0x3a3   :  { %v654_v32 = vpop.f32.mrf.mxu1 }
 0x3a4   :  { %v762_v33 = vpack.c.bf16 %v748_v26, %v747_v27  ;;  %v710_v34 = vmax.f32 %v660_v28, 0.0  ;;  %v655_v35 = vadd.f32 %v3263_v45, %v654_v32  ;;  %v728_v36 = vmul.f32 %v3269_v48, %v707_v31 }
 0x3a5   :  { %v2539_v37 = vpop.f32.mrf.mxu1  ;;  %v750_v60 = vadd.f32 %v3276_v54, %v729_v29 }
 0x3a6   :  { %v731_v38 = vmul.f32 %v3269_v48, %v710_v34  ;;  %v709_v39 = vmax.f32 %v655_v35, 0.0  ;;  %v670_v40 = vadd.f32 %v2539_v37, %v3263_v45  ;;  %2554 = vmatmul.mubr.msk.bf16.vlgmr.msra.gmra.mxu0 %vm77_vm0, %v762_v33  ;;  %v749_v41 = vadd.f32 %v3276_v54, %v728_v36 }
 0x3a7   :  { %v664_v42 = vpop.f32.mrf.mxu1 }
 0x3a8   :  { %v730_v43 = vmul.f32 %v3269_v48, %v709_v39  ;;  %v712_v63 = vmax.f32 %v670_v40, 0.0  ;;  %v665_v61 = vadd.f32 %v3263_v45, %v664_v42  ;;  %v763_v62 = vpack.c.bf16 %v750_v60, %v749_v41 }
 0x3a9   :  { %v752_v0 = vadd.f32 %v3276_v54, %v731_v38  ;;  %v2542_v5 = vpop.f32.mrf.mxu1 }
 0x3aa   :  { %v751_v1 = vadd.f32 %v3276_v54, %v730_v43  ;;  %v733_v2 = vmul.f32 %v3269_v48, %v712_v63  ;;  %v711_v3 = vmax.f32 %v665_v61, 0.0  ;;  %v680_v4 = vadd.f32 %v2542_v5, %v3263_v45  ;;  %2557 = vmatprep.mubr.msk.bf16.mxu0 %vm77_vm0, %v763_v62 }
 0x3ab   :  { %v674_v7 = vpop.f32.mrf.mxu1 }
 0x3ac   :  { %v764_v8 = vpack.c.bf16 %v752_v0, %v751_v1  ;;  %v732_v9 = vmul.f32 %v3269_v48, %v711_v3  ;;  %v714_v10 = vmax.f32 %v680_v4, 0.0  ;;  %v675_v11 = vadd.f32 %v3263_v45, %v674_v7 }
 0x3ad   :  { %v2545_v12 = vpop.f32.mrf.mxu1  ;;  %v754_v13 = vadd.f32 %v3276_v54, %v733_v2 }
 0x3ae   :  { %v753_v14 = vadd.f32 %v3276_v54, %v732_v9  ;;  %v690_v44 = vadd.f32 %v2545_v12, %v3263_v45  ;;  %2558 = vmatmul.mubr.msk.bf16.gmra.mxu0 %vm77_vm0, %v764_v8  ;;  %v735_v46 = vmul.f32 %v3269_v48, %v714_v10  ;;  %v713_v47 = vmax.f32 %v675_v11, 0.0 }
 0x3af   :  { %v684_v49 = vpop.f32.mrf.mxu1 }
 0x3b0   :  { %v765_v50 = vpack.c.bf16 %v754_v13, %v753_v14  ;;  %v716_v51 = vmax.f32 %v690_v44, 0.0  ;;  %v685_v52 = vadd.f32 %v3263_v45, %v684_v49  ;;  %v734_v53 = vmul.f32 %v3269_v48, %v713_v47 }
 0x3b1   :  { %v2548_v55 = vpop.f32.mrf.mxu1  ;;  %v756_v19 = vadd.f32 %v3276_v54, %v735_v46 }
 0x3b2   :  { %v737_v56 = vmul.f32 %v3269_v48, %v716_v51  ;;  %v715_v57 = vmax.f32 %v685_v52, 0.0  ;;  %v700_v58 = vadd.f32 %v2548_v55, %v3263_v45  ;;  %2561 = vmatprep.mubr.msk.bf16.mxu0 %vm77_vm0, %v765_v50  ;;  %v755_v30 = vadd.f32 %v3276_v54, %v734_v53 }
 0x3b3   :  { %v694_v59 = vpop.f32.mrf.mxu1 }
 0x3b4   :  { %v736_v6 = vmul.f32 %v3269_v48, %v715_v57  ;;  %v718_v15 = vmax.f32 %v700_v58, 0.0  ;;  %v695_v16 = vadd.f32 %v3263_v45, %v694_v59  ;;  %v766_v17 = vpack.c.bf16 %v756_v19, %v755_v30 }
 0x3b5   :  { %v758_v18 = vadd.f32 %v3276_v54, %v737_v56  ;;  %v2575_v27 = vpop.f32.mrf.mxu1 }
 0x3b6   :  { %v757_v20 = vadd.f32 %v3276_v54, %v736_v6  ;;  %v739_v21 = vmul.f32 %v3269_v48, %v718_v15  ;;  %v717_v22 = vmax.f32 %v695_v16, 0.0  ;;  %2562 = vmatmul.mubr.msk.bf16.gmra.mxu0 %vm77_vm0, %v766_v17 }
 0x3b7   :  { %v957_v28 = vpop.f32.mrf.mxu1 }
 0x3b8   :  { %v767_v23 = vpack.c.bf16 %v758_v18, %v757_v20  ;;  %v738_v24 = vmul.f32 %v3269_v48, %v717_v22  ;;  %v760_v25 = vadd.f32 %v3276_v54, %v739_v21  ;;  %v3334_v48 = vld [vmem:[%s4070_s4 + $0x6] ss:$0 sm:$0xff] }
 0x3b9   :  { %v2576_v29 = vpop.f32.mrf.mxu1 }
 0x3ba   :  { %v759_v26 = vadd.f32 %v3276_v54, %v738_v24  ;;  %2565 = vmatprep.mubr.msk.bf16.mxu0 %vm77_vm0, %v767_v23 }
 0x3bb   :  { %v960_v31 = vpop.f32.mrf.mxu1 }
 0x3bc   :  { %v768_v45 = vpack.c.bf16 %v760_v25, %v759_v26 }
 0x3bd   :  { %v2579_v32 = vpop.f32.mrf.mxu1 }
 0x3be   :  { %2566 = vmatmul.mubr.msk.bf16.gmra.mxu0 %vm77_vm0, %v768_v45 }
 0x3bf   :  { %v973_v33 = vpop.f32.mrf.mxu1 }
 0x3c1   :  { %v2580_v54 = vpop.f32.mrf.mxu1 }
 0x3c3   :  { %v976_v42 = vpop.f32.mrf.mxu1 }
 0x3c5   :  { %v2583_v5 = vpop.f32.mrf.mxu1 }
 0x3c7   :  { %v989_v8 = vpop.f32.mrf.mxu1 }
 0x3c9   :  { %v2584_v44 = vpop.f32.mrf.mxu1 }
 0x3cb   :  { %v992_v53 = vpop.f32.mrf.mxu1 }
 0x3cd   :  { %v2587_v30 = vpop.f32.mrf.mxu1 }
 0x3cf   :  { %v1005_v17 = vpop.f32.mrf.mxu1 }
 0x3d1   :  { %v2588_v24 = vpop.f32.mrf.mxu1 }
 0x466   :  { %v2555_v34 = vpop.f32.mrf.mxu0 }
 0x467   :  { %v966_v35 = vadd.f32 %v2575_v27, %v2555_v34 }
 0x468   :  { %v848_v36 = vpop.f32.mrf.mxu0 }
 0x469   :  { %v3337_v37 = vadd.f32 %v3334_v48, %v966_v35  ;;  %v958_v38 = vadd.f32 %v957_v28, %v848_v36  ;;  %v1008_v28 = vpop.f32.mrf.mxu1 }
 0x46a   :  { %v2556_v39 = vpop.f32.mrf.mxu0 }
 0x46b   :  { %2621 = vtanh.f32 %v3337_v37  ;;  %v3341_v40 = vadd.f32 %v3334_v48, %v958_v38  ;;  %v969_v60 = vadd.f32 %v2576_v29, %v2556_v39 }
 0x46c   :  { %v851_v41 = vpop.f32.mrf.mxu0 }
 0x46d   :  { %v3344_v43 = vadd.f32 %v3334_v48, %v969_v60  ;;  %v961_v63 = vadd.f32 %v960_v31, %v851_v41  ;;  %2623 = vtanh.f32 %v3341_v40 }
 0x46e   :  { %v2559_v61 = vpop.f32.mrf.mxu0 }
 0x46f   :  { %v3348_v62 = vadd.f32 %v3334_v48, %v961_v63  ;;  %2625 = vtanh.f32 %v3344_v43  ;;  %v982_v1 = vadd.f32 %v2579_v32, %v2559_v61  ;;  %v2234_v61 = vmul.f32 -1.442695, %v3337_v37 }
 0x470   :  { %v864_v0 = vpop.f32.mrf.mxu0 }
 0x471   :  { %v974_v2 = vadd.f32 %v973_v33, %v864_v0  ;;  %2627 = vtanh.f32 %v3348_v62  ;;  %v3356_v9 = vadd.f32 %v3334_v48, %v982_v1  ;;  %v2232_v0 = vmul.f32 -1.442695, %v3341_v40 }
 0x472   :  { %v2560_v3 = vpop.f32.mrf.mxu0  ;;  %v2235_v1 = vmul.f32 -1.442695, %v3344_v43 }
 0x473   :  { %v3353_v4 = vadd.f32 %v3334_v48, %v974_v2  ;;  %v985_v11 = vadd.f32 %v2580_v54, %v2560_v3  ;;  %v2238_v3 = vmul.f32 -1.442695, %v3356_v9 }
 0x474   :  { %v867_v7 = vpop.f32.mrf.mxu0 }
 0x475   :  { %v977_v10 = vadd.f32 %v976_v42, %v867_v7  ;;  %2629 = vtanh.f32 %v3353_v4  ;;  %v3365_v47 = vadd.f32 %v3334_v48, %v985_v11  ;;  %v2236_v2 = vmul.f32 -1.442695, %v3353_v4 }
 0x476   :  { %v2563_v13 = vpop.f32.mrf.mxu0  ;;  %2631 = vtanh.f32 %v3356_v9 }
 0x477   :  { %v3360_v12 = vadd.f32 %v3334_v48, %v977_v10  ;;  %v998_v56 = vadd.f32 %v2583_v5, %v2563_v13  ;;  %v2233_v5 = vmul.f32 -1.442695, %v3348_v62 }
 0x478   :  { %v2622_v14 = vpop.eup %2621  ;;  %v880_v46 = vpop.f32.mrf.mxu0 }
 0x479   :  { %1173 = vrot.lane.b32.xlu1 %v2622_v14, %s2925_s10  ;;  %2633 = vtanh.f32 %v3360_v12  ;;  %v990_v49 = vadd.f32 %v989_v8, %v880_v46  ;;  %v3376_v59 = vadd.f32 %v3334_v48, %v998_v56  ;;  %v2237_v7 = vmul.f32 -1.442695, %v3360_v12 }
 0x47a   :  { %v2624_v50 = vpop.eup %2623  ;;  %v2564_v51 = vpop.f32.mrf.mxu0  ;;  %2635 = vtanh.f32 %v3365_v47  ;;  %v2239_v8 = vmul.f32 -1.442695, %v3365_v47 }
 0x47b   :  { %1169 = vrot.lane.b32.xlu0 %v2624_v50, %s2925_s10  ;;  %v3371_v57 = vadd.f32 %v3334_v48, %v990_v49  ;;  %v1001_v20 = vadd.f32 %v2584_v44, %v2564_v51  ;;  %v2242_v4 = vmul.f32 -1.442695, %v3376_v59 }
 0x47c   :  { %v2626_v52 = vpop.eup %2625  ;;  %v883_v55 = vpop.f32.mrf.mxu0 }
 0x47d   :  { %1175 = vrot.lane.b32.xlu1 %v2626_v52, %s2925_s10  ;;  %2637 = vtanh.f32 %v3371_v57  ;;  %v993_v6 = vadd.f32 %v992_v53, %v883_v55  ;;  %v3387_v26 = vadd.f32 %v3334_v48, %v1001_v20  ;;  %v2240_v62 = vmul.f32 -1.442695, %v3371_v57 }
 0x47e   :  { %v2628_v58 = vpop.eup %2627  ;;  %v2567_v19 = vpop.f32.mrf.mxu0  ;;  %2639 = vtanh.f32 %v3376_v59 }
 0x47f   :  { %1171 = vrot.lane.b32.xlu0 %v2628_v58, %s2925_s10  ;;  %v3382_v21 = vadd.f32 %v3334_v48, %v993_v6  ;;  %v1014_v29 = vadd.f32 %v2587_v30, %v2567_v19  ;;  %v2243_v51 = vmul.f32 -1.442695, %v3387_v26 }
 0x480   :  { %v896_v16 = vpop.f32.mrf.mxu0 }
 0x481   :  { %v1006_v25 = vadd.f32 %v1005_v17, %v896_v16  ;;  %2641 = vtanh.f32 %v3382_v21  ;;  %v3397_v34 = vadd.f32 %v3334_v48, %v1014_v29  ;;  %v2241_v44 = vmul.f32 -1.442695, %v3382_v21 }
 0x482   :  { %v2630_v15 = vpop.eup %2629  ;;  %v2568_v23 = vpop.f32.mrf.mxu0  ;;  %2643 = vtanh.f32 %v3387_v26 }
 0x483   :  { %1177 = vrot.lane.b32.xlu0 %v2630_v15, %s2925_s10  ;;  %v2632_v18 = vpop.eup %2631  ;;  %v3392_v31 = vadd.f32 %v3334_v48, %v1006_v25  ;;  %v1017_v35 = vadd.f32 %v2588_v24, %v2568_v23  ;;  %v2246_v57 = vmul.f32 -1.442695, %v3397_v34 }
 0x484   :  { %v899_v27 = vpop.f32.mrf.mxu0 }
 0x485   :  { %v1009_v32 = vadd.f32 %v1008_v28, %v899_v27  ;;  %2645 = vtanh.f32 %v3392_v31  ;;  %v3406_v38 = vadd.f32 %v3334_v48, %v1017_v35  ;;  %v2244_v19 = vmul.f32 -1.442695, %v3392_v31 }
 0x486   :  { %v2634_v22 = vpop.eup %2633  ;;  %2647 = vtanh.f32 %v3397_v34 }
 0x487   :  { %1181 = vrot.lane.b32.xlu0 %v2632_v18, %s2925_s10  ;;  %1179 = vrot.lane.b32.xlu1 %v2634_v22, %s2925_s10  ;;  %v2636_v45 = vpop.eup %2635  ;;  %v3401_v36 = vadd.f32 %v3334_v48, %v1009_v32  ;;  %v2247_v26 = vmul.f32 -1.442695, %v3406_v38 }
 0x489   :  { %2649 = vtanh.f32 %v3401_v36  ;;  %v2245_v17 = vmul.f32 -1.442695, %v3401_v36 }
 0x48a   :  { %v2638_v33 = vpop.eup %2637  ;;  %2651 = vtanh.f32 %v3406_v38 }
 0x48b   :  { %1183 = vrot.lane.b32.xlu1 %v2636_v45, %s2925_s10  ;;  %1185 = vrot.lane.b32.xlu0 %v2638_v33, %s2925_s10  ;;  %v2640_v54 = vpop.eup %2639  ;;  %2653 = vpow2.f32 %v2234_v61 }
 0x48c   :  { %2655 = vpow2.f32 %v2232_v0 }
 0x48d   :  { %2657 = vpow2.f32 %v2233_v5 }
 0x48e   :  { %v2642_v39 = vpop.eup %2641  ;;  %2659 = vpow2.f32 %v2235_v1 }
 0x48f   :  { %1189 = vrot.lane.b32.xlu0 %v2640_v54, %s2925_s10  ;;  %1187 = vrot.lane.b32.xlu1 %v2642_v39, %s2925_s10  ;;  %v2644_v60 = vpop.eup %2643  ;;  %2661 = vpow2.f32 %v2236_v2 }
 0x490   :  { %2663 = vpow2.f32 %v2238_v3 }
 0x491   :  { %2665 = vpow2.f32 %v2237_v7 }
 0x492   :  { %v2646_v41 = vpop.eup %2645  ;;  %2667 = vpow2.f32 %v2239_v8 }
 0x493   :  { %1191 = vrot.lane.b32.xlu1 %v2644_v60, %s2925_s10  ;;  %1193 = vrot.lane.b32.xlu0 %v2646_v41, %s2925_s10  ;;  %v2648_v42 = vpop.eup %2647  ;;  %2669 = vpow2.f32 %v2240_v62 }
 0x496   :  { %v2650_v63 = vpop.eup %2649 }
 0x497   :  { %1197 = vrot.lane.b32.xlu0 %v2648_v42, %s2925_s10  ;;  %1195 = vrot.lane.b32.xlu1 %v2650_v63, %s2925_s10  ;;  %v2652_v48 = vpop.eup %2651 }
 0x498   :  { %v2654_v37 = vpop.eup %2653 }
 0x499   :  { %v2656_v40 = vpop.eup %2655  ;;  %v1091_v10 = vadd.f32 1.0, %v2654_v37 }
 0x49a   :  { %v1089_v43 = vadd.f32 1.0, %v2656_v40  ;;  %v2658_v11 = vpop.eup %2657 }
 0x49b   :  { %1199 = vrot.lane.b32.xlu1 %v2652_v48, %s2925_s10  ;;  %v2660_v13 = vpop.eup %2659  ;;  %2671 = vrcp.f32 %v1091_v10  ;;  %v1090_v9 = vadd.f32 1.0, %v2658_v11 }
 0x49c   :  { %2673 = vrcp.f32 %v1089_v43  ;;  %v2662_v12 = vpop.eup %2661  ;;  %v1092_v14 = vadd.f32 1.0, %v2660_v13 }
 0x49d   :  { %2675 = vpow2.f32 %v2242_v4  ;;  %v2664_v46 = vpop.eup %2663  ;;  %v1093_v47 = vadd.f32 1.0, %v2662_v12 }
 0x49e   :  { %2677 = vrcp.f32 %v1090_v9  ;;  %v2666_v49 = vpop.eup %2665  ;;  %v1095_v52 = vadd.f32 1.0, %v2664_v46 }
 0x49f   :  { %2679 = vrcp.f32 %v1092_v14  ;;  %v2668_v50 = vpop.eup %2667  ;;  %v1094_v53 = vadd.f32 1.0, %v2666_v49 }
 0x4a0   :  { %2681 = vpow2.f32 %v2241_v44  ;;  %v1096_v55 = vadd.f32 1.0, %v2668_v50  ;;  %v2670_v56 = vpop.eup %2669 }
 0x4a1   :  { %2683 = vrcp.f32 %v1093_v47  ;;  %v1097_v6 = vadd.f32 1.0, %v2670_v56 }
 0x4a2   :  { %2685 = vpow2.f32 %v2243_v51 }
 0x4a3   :  { %2687 = vrcp.f32 %v1095_v52 }
 0x4a4   :  { %2689 = vrcp.f32 %v1094_v53 }
 0x4a5   :  { %2691 = vrcp.f32 %v1096_v55 }
 0x4a6   :  { %2693 = vpow2.f32 %v2246_v57 }
 0x4a7   :  { %2695 = vpow2.f32 %v2244_v19 }
 0x4a8   :  { %v3430_v30 = vpop.eup %2671 }
 0x4a9   :  { %v3432_v59 = vpop.eup %2673 }
 0x4aa   :  { %v2676_v16 = vpop.eup %2675 }
 0x4ab   :  { %v3437_v22 = vpop.eup %2677  ;;  %v1099_v23 = vadd.f32 1.0, %v2676_v16 }
 0x4ac   :  { %v3439_v25 = vpop.eup %2679 }
 0x4ad   :  { %v2682_v28 = vpop.eup %2681 }
 0x4ae   :  { %v3444_v29 = vpop.eup %2683  ;;  %v1098_v34 = vadd.f32 1.0, %v2682_v28 }
 0x4af   :  { %v2686_v33 = vpop.eup %2685 }
 0x4b0   :  { %v3447_v35 = vpop.eup %2687  ;;  %v1100_v63 = vadd.f32 1.0, %v2686_v33 }
 0x4b1   :  { %v3449_v36 = vpop.eup %2689 }
 0x4b2   :  { %v3451_v39 = vpop.eup %2691 }
 0x4b3   :  { %v2694_v42 = vpop.eup %2693 }
 0x4b4   :  { %v2696_v48 = vpop.eup %2695  ;;  %v1103_v62 = vadd.f32 1.0, %v2694_v42 }
 0x4b5   :  { %v1101_v3 = vadd.f32 1.0, %v2696_v48 }
 0x4eb   :  { %v1174_v58 = vpop.permute.xlu1 %1173 }
 0x4ec   :  { %v1219_v20 = vmul.f32 %v3430_v30, %v1174_v58 }
 0x4ed   :  { %v1170_v15 = vpop.permute.xlu0 %1169 }
 0x4ee   :  { %v1217_v18 = vmul.f32 %v3432_v59, %v1170_v15 }
 0x4ef   :  { %v1176_v21 = vpop.permute.xlu1 %1175 }
 0x4f0   :  { %2697 = vtanh.f32 %v1217_v18  ;;  %v1220_v27 = vmul.f32 %v3439_v25, %v1176_v21 }
 0x4f1   :  { %2699 = vrcp.f32 %v1097_v6  ;;  %v1172_v24 = vpop.permute.xlu0 %1171 }
 0x4f2   :  { %2701 = vpow2.f32 %v2245_v17  ;;  %v1218_v45 = vmul.f32 %v3437_v22, %v1172_v24 }
 0x4f3   :  { %2703 = vtanh.f32 %v1219_v20 }
 0x4f4   :  { %2705 = vtanh.f32 %v1218_v45 }
 0x4f5   :  { %2707 = vrcp.f32 %v1099_v23  ;;  %v1178_v31 = vpop.permute.xlu0 %1177 }
 0x4f6   :  { %2709 = vpow2.f32 %v2247_v26  ;;  %v1221_v32 = vmul.f32 %v3444_v29, %v1178_v31  ;;  %v2619_v31 = vld [vmem:[%s4071_s3 + $0x28] sm:$0xff]  }
 0x4f7   :  { %2711 = vtanh.f32 %v1220_v27  ;;  %2589 = vmatprep.subr.bf16.mxu0 %v2619_v31 }
 0x4f8   :  { %2713 = vtanh.f32 %v1221_v32  ;;  %v2620_v32 = vld [vmem:[%s4071_s3 + $0x20] sm:$0xff]   ;;  %2590 = vmatpush3.bf16.msra.mxu0 %v2619_v31 }
 0x4f9   :  { %v1182_v54 = vpop.permute.xlu0 %1181  ;;  %v1180_v38 = vpop.permute.xlu1 %1179  ;;  %2715 = vrcp.f32 %v1098_v34  ;;  %2591 = vmatprep.subr.bf16.mxu0 %v2620_v32 }
 0x4fa   :  { %v1223_v60 = vmul.f32 %v3447_v35, %v1182_v54  ;;  %v1222_v41 = vmul.f32 %v3449_v36, %v1180_v38 }
 0x4fc   :  { %2717 = vtanh.f32 %v1223_v60  ;;  %2592 = vmatpush3.bf16.msra.mxu0 %v2620_v32 }
 0x4fd   :  { %v2698_v61 = vpop.eup %2697  ;;  %2719 = vtanh.f32 %v1222_v41  ;;  %v1184_v0 = vpop.permute.xlu1 %1183 }
 0x4fe   :  { %v3455_v5 = vpop.eup %2699  ;;  %v1224_v1 = vmul.f32 %v3451_v39, %v1184_v0  ;;  %1265 = vrot.lane.b32.xlu0 %v2698_v61, %s2926_s11  ;;  %2721 = vrcp.f32 %v1100_v63  ;;  %v1186_v37 = vpop.permute.xlu0 %1185 }
 0x4ff   :  { %v2702_v2 = vpop.eup %2701  ;;  %v1225_v10 = vmul.f32 %v3455_v5, %v1186_v37 }
 0x500   :  { %v2704_v7 = vpop.eup %2703  ;;  %2723 = vtanh.f32 %v1224_v1  ;;  %v1102_v11 = vadd.f32 1.0, %v2702_v2 }
 0x501   :  { %v2706_v8 = vpop.eup %2705  ;;  %2725 = vrcp.f32 %v1101_v3  ;;  %v1188_v47 = vpop.permute.xlu1 %1187 }
 0x502   :  { %v3459_v40 = vpop.eup %2707  ;;  %1269 = vrot.lane.b32.xlu0 %v2704_v7, %s2926_s11  ;;  %1267 = vrot.lane.b32.xlu1 %v2706_v8, %s2926_s11  ;;  %2727 = vtanh.f32 %v1225_v10  ;;  %v1190_v9 = vpop.permute.xlu0 %1189 }
 0x503   :  { %v2710_v43 = vpop.eup %2709  ;;  %2729 = vrcp.f32 %v1103_v62  ;;  %v1227_v12 = vmul.f32 %v3459_v40, %v1190_v9 }
 0x504   :  { %v2712_v4 = vpop.eup %2711  ;;  %v1104_v14 = vadd.f32 1.0, %v2710_v43  ;;  %2731 = vrcp.f32 %v1102_v11 }
 0x505   :  { %v2714_v13 = vpop.eup %2713  ;;  %2733 = vtanh.f32 %v1227_v12  ;;  %v1192_v53 = vpop.permute.xlu1 %1191 }
 0x506   :  { %1273 = vrot.lane.b32.xlu0 %v2714_v13, %s2926_s11  ;;  %1271 = vrot.lane.b32.xlu1 %v2712_v4, %s2926_s11  ;;  %v3467_v44 = vpop.eup %2715  ;;  %2735 = vrcp.f32 %v1104_v14  ;;  %v1194_v57 = vpop.permute.xlu0 %1193 }
 0x507   :  { %v1226_v50 = vmul.f32 %v3467_v44, %v1188_v47 }
 0x509   :  { %v2718_v46 = vpop.eup %2717  ;;  %2737 = vtanh.f32 %v1226_v50  ;;  %v1196_v20 = vpop.permute.xlu1 %1195 }
 0x50a   :  { %v2720_v49 = vpop.eup %2719  ;;  %1277 = vrot.lane.b32.xlu0 %v2718_v46, %s2926_s11  ;;  %v1198_v16 = vpop.permute.xlu0 %1197 }
 0x50b   :  { %1275 = vrot.lane.b32.xlu1 %v2720_v49, %s2926_s11  ;;  %v3472_v51 = vpop.eup %2721 }
 0x50c   :  { %v1228_v55 = vmul.f32 %v3472_v51, %v1192_v53 }
 0x50d   :  { %v2724_v52 = vpop.eup %2723  ;;  %v1200_v26 = vpop.permute.xlu1 %1199 }
 0x50e   :  { %v3476_v56 = vpop.eup %2725  ;;  %2739 = vtanh.f32 %v1228_v55 }
 0x50f   :  { %1279 = vrot.lane.b32.xlu1 %v2724_v52, %s2926_s11  ;;  %v2728_v58 = vpop.eup %2727  ;;  %v1229_v19 = vmul.f32 %v3476_v56, %v1194_v57 }
 0x510   :  { %1281 = vrot.lane.b32.xlu0 %v2728_v58, %s2926_s11  ;;  %v3480_v6 = vpop.eup %2729 }
 0x511   :  { %2741 = vtanh.f32 %v1229_v19  ;;  %v3482_v15 = vpop.eup %2731  ;;  %v1231_v18 = vmul.f32 %v3480_v6, %v1198_v16  ;;  %v3585_v16 = vld [vmem:[%s4070_s4 + $0x7] ss:$0 sm:$0xff] }
 0x512   :  { %v2734_v17 = vpop.eup %2733  ;;  %v1230_v21 = vmul.f32 %v3482_v15, %v1196_v20 }
 0x513   :  { %2743 = vtanh.f32 %v1231_v18  ;;  %v3487_v23 = vpop.eup %2735 }
 0x514   :  { %1285 = vrot.lane.b32.xlu0 %v2734_v17, %s2926_s11  ;;  %2745 = vtanh.f32 %v1230_v21  ;;  %v1232_v45 = vmul.f32 %v3487_v23, %v1200_v26 }
 0x516   :  { %v2738_v24 = vpop.eup %2737  ;;  %2747 = vtanh.f32 %v1232_v45 }
 0x517   :  { %1283 = vrot.lane.b32.xlu1 %v2738_v24, %s2926_s11 }
 0x51b   :  { %v2740_v27 = vpop.eup %2739 }
 0x51c   :  { %1287 = vrot.lane.b32.xlu1 %v2740_v27, %s2926_s11 }
 0x51e   :  { %v2742_v28 = vpop.eup %2741 }
 0x51f   :  { %1289 = vrot.lane.b32.xlu0 %v2742_v28, %s2926_s11 }
 0x520   :  { %v2744_v33 = vpop.eup %2743 }
 0x521   :  { %v2746_v34 = vpop.eup %2745 }
 0x522   :  { %1291 = vrot.lane.b32.xlu1 %v2746_v34, %s2926_s11 }
 0x523   :  { %1293 = vrot.lane.b32.xlu0 %v2744_v33, %s2926_s11  ;;  %v2748_v54 = vpop.eup %2747 }
 0x526   :  { %1295 = vrot.lane.b32.xlu1 %v2748_v54, %s2926_s11 }
 0x570   :  { %v1266_v38 = vpop.permute.xlu0 %1265 }
 0x571   :  { %v3503_v42 = vmul.f32 %v3432_v59, %v1266_v38 }
 0x574   :  { %v1270_v60 = vpop.permute.xlu0 %1269  ;;  %v1268_v41 = vpop.permute.xlu1 %1267 }
 0x575   :  { %v3506_v63 = vmul.f32 %v3437_v22, %v1268_v41  ;;  %v3511_v0 = vmul.f32 %v3430_v30, %v1270_v60 }
 0x577   :  { %v1329_v48 = vpack.c.bf16 %v3506_v63, %v3503_v42 }
 0x578   :  { %v1272_v61 = vpop.permute.xlu1 %1271  ;;  %v1274_v1 = vpop.permute.xlu0 %1273 }
 0x579   :  { %v3514_v2 = vmul.f32 %v3439_v25, %v1272_v61  ;;  %1355 = vrot.lane.b32.xlu0 %v1329_v48, %s2926_s11  ;;  %v3521_v22 = vmul.f32 %v3444_v29, %v1274_v1 }
 0x57b   :  { %v1330_v59 = vpack.c.bf16 %v3514_v2, %v3511_v0 }
 0x57c   :  { %v1278_v30 = vpop.permute.xlu0 %1277 }
 0x57d   :  { %v1276_v3 = vpop.permute.xlu1 %1275  ;;  %1357 = vrot.lane.b32.xlu1 %v1330_v59, %s2926_s11  ;;  %v3529_v37 = vmul.f32 %v3447_v35, %v1278_v30 }
 0x57e   :  { %v3524_v7 = vmul.f32 %v3449_v36, %v1276_v3 }
 0x580   :  { %v1331_v8 = vpack.c.bf16 %v3524_v7, %v3521_v22 }
 0x581   :  { %v1280_v25 = vpop.permute.xlu1 %1279 }
 0x582   :  { %v3532_v62 = vmul.f32 %v3451_v39, %v1280_v25  ;;  %1359 = vrot.lane.b32.xlu0 %v1331_v8, %s2926_s11  ;;  %v1282_v36 = vpop.permute.xlu0 %1281 }
 0x583   :  { %v3539_v43 = vmul.f32 %v3455_v5, %v1282_v36 }
 0x584   :  { %v1332_v29 = vpack.c.bf16 %v3532_v62, %v3529_v37 }
 0x586   :  { %1361 = vrot.lane.b32.xlu1 %v1332_v29, %s2926_s11  ;;  %v1286_v35 = vpop.permute.xlu0 %1285 }
 0x587   :  { %v3547_v13 = vmul.f32 %v3459_v40, %v1286_v35 }
 0x589   :  { %v1284_v10 = vpop.permute.xlu1 %1283 }
 0x58a   :  { %v3542_v11 = vmul.f32 %v3467_v44, %v1284_v10 }
 0x58c   :  { %v1333_v39 = vpack.c.bf16 %v3542_v11, %v3539_v43 }
 0x58e   :  { %v1288_v4 = vpop.permute.xlu1 %1287  ;;  %1363 = vrot.lane.b32.xlu0 %v1333_v39, %s2926_s11 }
 0x58f   :  { %v3550_v9 = vmul.f32 %v3472_v51, %v1288_v4 }
 0x591   :  { %v1334_v5 = vpack.c.bf16 %v3550_v9, %v3547_v13  ;;  %v1290_v12 = vpop.permute.xlu0 %1289 }
 0x592   :  { %v3557_v44 = vmul.f32 %v3476_v56, %v1290_v12 }
 0x593   :  { %1365 = vrot.lane.b32.xlu1 %v1334_v5, %s2926_s11 }
 0x594   :  { %v1292_v14 = vpop.permute.xlu1 %1291 }
 0x595   :  { %v3560_v46 = vmul.f32 %v3482_v15, %v1292_v14  ;;  %v1294_v40 = vpop.permute.xlu0 %1293 }
 0x596   :  { %v3565_v50 = vmul.f32 %v3480_v6, %v1294_v40 }
 0x597   :  { %v1335_v47 = vpack.c.bf16 %v3560_v46, %v3557_v44 }
 0x598   :  { %v1296_v49 = vpop.permute.xlu1 %1295 }
 0x599   :  { %v3568_v51 = vmul.f32 %v3487_v23, %v1296_v49  ;;  %1367 = vrot.lane.b32.xlu0 %v1335_v47, %s2926_s11 }
 0x59b   :  { %v1336_v52 = vpack.c.bf16 %v3568_v51, %v3565_v50 }
 0x59d   :  { %1369 = vrot.lane.b32.xlu1 %v1336_v52, %s2926_s11 }
 0x5eb   :  { %v1356_v53 = vpop.permute.xlu0 %1355 }
 0x5ec   :  { %2593 = vmatprep.mubr.msk.bf16.mxu0 %vm77_vm0, %v1356_v53 }
 0x5ef   :  { %v1358_v55 = vpop.permute.xlu1 %1357 }
 0x5f0   :  { %2594 = vmatmul.mubr.msk.bf16.vlgmr.msra.gmra.mxu0 %vm77_vm0, %v1358_v55 }
 0x5f4   :  { %v1360_v56 = vpop.permute.xlu0 %1359 }
 0x5f5   :  { %2597 = vmatprep.mubr.msk.bf16.mxu0 %vm77_vm0, %v1360_v56 }
 0x5f8   :  { %v1362_v57 = vpop.permute.xlu1 %1361 }
 0x5f9   :  { %2598 = vmatmul.mubr.msk.bf16.gmra.mxu0 %vm77_vm0, %v1362_v57 }
 0x600   :  { %v1364_v58 = vpop.permute.xlu0 %1363 }
 0x601   :  { %2601 = vmatprep.mubr.msk.bf16.mxu0 %vm77_vm0, %v1364_v58 }
 0x605   :  { %v1366_v19 = vpop.permute.xlu1 %1365 }
 0x606   :  { %2602 = vmatmul.mubr.msk.bf16.gmra.mxu0 %vm77_vm0, %v1366_v19 }
 0x60b   :  { %v1368_v6 = vpop.permute.xlu0 %1367 }
 0x60c   :  { %2605 = vmatprep.mubr.msk.bf16.mxu0 %vm77_vm0, %v1368_v6 }
 0x60f   :  { %v1370_v15 = vpop.permute.xlu1 %1369 }
 0x610   :  { %2606 = vmatmul.mubr.msk.bf16.gmra.mxu0 %vm77_vm0, %v1370_v15  ;;  %v2909_v15 = vld [vmem:[%s4068_s1] sm:$0xff] }
 0x6b0   :  { %v2595_v17 = vpop.f32.mrf.mxu0 }
 0x6b1   :  { %v3588_v18 = vadd.f32 %v2595_v17, %v3585_v16  ;;  %v2279_v17 = vld [vmem:[%s4070_s4 + $0x8] ss:$0 sm:$0xff] }
 0x6b2   :  { %v1441_v20 = vpop.f32.mrf.mxu0 }
 0x6b3   :  { %2749 = vtanh.f32 %v3588_v18  ;;  %v3592_v21 = vadd.f32 %v3585_v16, %v1441_v20  ;;  %v3674_v20 = vld [vmem:[%s4070_s4 + $0xa] ss:$0 sm:$0xff] }
 0x6b4   :  { %v2596_v23 = vpop.f32.mrf.mxu0 }
 0x6b5   :  { %v3595_v24 = vadd.f32 %v2596_v23, %v3585_v16  ;;  %2751 = vtanh.f32 %v3592_v21 }
 0x6b6   :  { %v1444_v26 = vpop.f32.mrf.mxu0 }
 0x6b7   :  { %v3599_v45 = vadd.f32 %v3585_v16, %v1444_v26  ;;  %2753 = vtanh.f32 %v3595_v24 }
 0x6b9   :  { %v2599_v27 = vpop.f32.mrf.mxu0  ;;  %2755 = vtanh.f32 %v3599_v45 }
 0x6ba   :  { %v3603_v28 = vadd.f32 %v2599_v27, %v3585_v16  ;;  %v2910_v27 = vld [vmem:[%s4068_s1 + $0x10] sm:$0xff] }
 0x6bb   :  { %v1457_v31 = vpop.f32.mrf.mxu0 }
 0x6bc   :  { %2757 = vtanh.f32 %v3603_v28  ;;  %v3608_v32 = vadd.f32 %v3585_v16, %v1457_v31  ;;  %v1892_v31 = vmax.f32 %v2910_v27, 0.0 }
 0x6bd   :  { %v2600_v33 = vpop.f32.mrf.mxu0 }
 0x6be   :  { %v3611_v34 = vadd.f32 %v2600_v33, %v3585_v16  ;;  %2759 = vtanh.f32 %v3608_v32 }
 0x6bf   :  { %v1460_v54 = vpop.f32.mrf.mxu0 }
 0x6c0   :  { %v2750_v38 = vpop.eup %2749  ;;  %2761 = vtanh.f32 %v3611_v34  ;;  %v3616_v60 = vadd.f32 %v3585_v16, %v1460_v54  ;;  %v2911_v54 = vld [vmem:[%s4068_s1 + $0x8] sm:$0xff] }
 0x6c1   :  { %1636 = vrot.lane.b32.xlu0 %v2750_v38, %s2925_s10  ;;  %v1891_v38 = vmax.f32 %v2911_v54, 0.0 }
 0x6c2   :  { %v2752_v41 = vpop.eup %2751  ;;  %2763 = vtanh.f32 %v3616_v60 }
 0x6c4   :  { %v2754_v48 = vpop.eup %2753 }
 0x6c5   :  { %1632 = vrot.lane.b32.xlu0 %v2752_v41, %s2925_s10  ;;  %1638 = vrot.lane.b32.xlu1 %v2754_v48, %s2925_s10  ;;  %v2280_v41 = vld [vmem:[%s4070_s4 + $0x9] ss:$0 sm:$0xff]  ;;  %v1913_v48 = vmul.f32 %v3674_v20, %v1892_v31  ;;  %v2920_v31 = vld [vmem:[%s4068_s1 + $0x58] sm:$0xff] }
 0x6c6   :  { %v2756_v61 = vpop.eup %2755  ;;  %v2603_v1 = vpop.f32.mrf.mxu0 }
 0x6c7   :  { %v3623_v3 = vadd.f32 %v2603_v1, %v3585_v16 }
 0x6c8   :  { %v1473_v30 = vpop.f32.mrf.mxu0 }
 0x6c9   :  { %v2758_v59 = vpop.eup %2757  ;;  %1634 = vrot.lane.b32.xlu1 %v2756_v61, %s2925_s10  ;;  %2765 = vtanh.f32 %v3623_v3  ;;  %v3629_v29 = vadd.f32 %v3585_v16, %v1473_v30  ;;  %v2912_v61 = vld [vmem:[%s4068_s1 + $0x20] sm:$0xff]  ;;  %v2913_v30 = vld [vmem:[%s4068_s1 + $0x18] sm:$0xff] }
 0x6ca   :  { %1644 = vrot.lane.b32.xlu0 %v2758_v59, %s2925_s10  ;;  %v2604_v8 = vpop.f32.mrf.mxu0  ;;  %v1894_v1 = vmax.f32 %v2912_v61, 0.0  ;;  %v1912_v59 = vmul.f32 %v3674_v20, %v1891_v38  ;;  %v2265_v38 = vmul.f32 -1.442695, %v3588_v18  ;;  %v2264_v61 = vmul.f32 -1.442695, %v3599_v45 }
 0x6cb   :  { %v2760_v25 = vpop.eup %2759  ;;  %2767 = vtanh.f32 %v3629_v29  ;;  %v3635_v35 = vadd.f32 %v2604_v8, %v3585_v16  ;;  %v1893_v8 = vmax.f32 %v2913_v30, 0.0  ;;  %v2270_v30 = vmul.f32 -1.442695, %v3611_v34 }
 0x6cc   :  { %v1476_v10 = vpop.f32.mrf.mxu0  ;;  %v2271_v34 = vmul.f32 -1.442695, %v3629_v29 }
 0x6cd   :  { %v2762_v36 = vpop.eup %2761  ;;  %2769 = vtanh.f32 %v3635_v35  ;;  %v3640_v5 = vadd.f32 %v3585_v16, %v1476_v10 }
 0x6ce   :  { %1640 = vrot.lane.b32.xlu0 %v2760_v25, %s2925_s10  ;;  %1646 = vrot.lane.b32.xlu1 %v2762_v36, %s2925_s10  ;;  %v1915_v25 = vmul.f32 %v3674_v20, %v1894_v1  ;;  %v2914_v36 = vld [vmem:[%s4068_s1 + $0x30] sm:$0xff]  ;;  %v2269_v1 = vmul.f32 -1.442695, %v3603_v28  ;;  %v2273_v28 = vmul.f32 -1.442695, %v3623_v3 }
 0x6cf   :  { %v2764_v39 = vpop.eup %2763  ;;  %2771 = vtanh.f32 %v3640_v5  ;;  %v1896_v10 = vmax.f32 %v2914_v36, 0.0  ;;  %v2272_v29 = vmul.f32 -1.442695, %v3640_v5 }
 0x6d0   :  { %v2607_v4 = vpop.f32.mrf.mxu0 }
 0x6d1   :  { %v3647_v49 = vadd.f32 %v2607_v4, %v3585_v16  ;;  %v2915_v4 = vld [vmem:[%s4068_s1 + $0x28] sm:$0xff] }
 0x6d2   :  { %1642 = vrot.lane.b32.xlu1 %v2764_v39, %s2925_s10  ;;  %v1489_v12 = vpop.f32.mrf.mxu0  ;;  %v1914_v39 = vmul.f32 %v3674_v20, %v1893_v8  ;;  %v2268_v8 = vmul.f32 -1.442695, %v3616_v60 }
 0x6d3   :  { %v3643_v14 = vadd.f32 %v3585_v16, %v1489_v12  ;;  %v1895_v12 = vmax.f32 %v2915_v4, 0.0 }
 0x6d4   :  { %v2608_v40 = vpop.f32.mrf.mxu0 }
 0x6d5   :  { %2773 = vtanh.f32 %v3643_v14  ;;  %v3657_v56 = vadd.f32 %v2608_v40, %v3585_v16  ;;  %v1917_v40 = vmul.f32 %v3674_v20, %v1896_v10 }
 0x6d6   :  { %v2766_v47 = vpop.eup %2765  ;;  %v1492_v52 = vpop.f32.mrf.mxu0  ;;  %2775 = vtanh.f32 %v3647_v49 }
 0x6d7   :  { %1652 = vrot.lane.b32.xlu0 %v2766_v47, %s2925_s10  ;;  %v3652_v53 = vadd.f32 %v3585_v16, %v1492_v52  ;;  %v1890_v16 = vmax.f32 %v2909_v15, 0.0  ;;  %v2916_v47 = vld [vmem:[%s4068_s1 + $0x40] sm:$0xff] }
 0x6d8   :  { %v2768_v55 = vpop.eup %2767  ;;  %v1898_v52 = vmax.f32 %v2916_v47, 0.0  ;;  %v2274_v47 = vmul.f32 -1.442695, %v3635_v35 }
 0x6d9   :  { %2777 = vtanh.f32 %v3652_v53  ;;  %v1911_v26 = vmul.f32 %v3674_v20, %v1890_v16 }
 0x6da   :  { %v2770_v57 = vpop.eup %2769  ;;  %2779 = vtanh.f32 %v3657_v56 }
 0x6db   :  { %1648 = vrot.lane.b32.xlu0 %v2768_v55, %s2925_s10  ;;  %1654 = vrot.lane.b32.xlu1 %v2770_v57, %s2925_s10  ;;  %v1916_v55 = vmul.f32 %v3674_v20, %v1895_v12  ;;  %v2917_v57 = vld [vmem:[%s4068_s1 + $0x38] sm:$0xff]  ;;  %2781 = vpow2.f32 %v2265_v38 }
 0x6dc   :  { %v2772_v58 = vpop.eup %2771 }
 0x6df   :  { %1650 = vrot.lane.b32.xlu1 %v2772_v58, %s2925_s10  ;;  %v1897_v58 = vmax.f32 %v2917_v57, 0.0 }
 0x6e1   :  { %v1918_v16 = vmul.f32 %v3674_v20, %v1897_v58 }
 0x6e2   :  { %v2774_v19 = vpop.eup %2773 }
 0x6e3   :  { %1656 = vrot.lane.b32.xlu0 %v2774_v19, %s2925_s10  ;;  %v2776_v6 = vpop.eup %2775  ;;  %v1919_v19 = vmul.f32 %v3674_v20, %v1898_v52 }
 0x6e6   :  { %v2778_v23 = vpop.eup %2777 }
 0x6e7   :  { %1660 = vrot.lane.b32.xlu0 %v2776_v6, %s2925_s10  ;;  %1658 = vrot.lane.b32.xlu1 %v2778_v23, %s2925_s10  ;;  %v2780_v33 = vpop.eup %2779  ;;  %v2918_v6 = vld [vmem:[%s4068_s1 + $0x50] sm:$0xff] }
 0x6e8   :  { %v1900_v15 = vmax.f32 %v2918_v6, 0.0  ;;  %v2782_v18 = vpop.eup %2781 }
 0x6eb   :  { %1814 = vrot.lane.b32.xlu0 %v2279_v17, %s2926_s11  ;;  %1662 = vrot.lane.b32.xlu1 %v2780_v33, %s2925_s10  ;;  %v2919_v17 = vld [vmem:[%s4068_s1 + $0x48] sm:$0xff]  ;;  %v1901_v33 = vmax.f32 %v2920_v31, 0.0 }
 0x6ec   :  { %v1899_v23 = vmax.f32 %v2919_v17, 0.0  ;;  %v2277_v17 = vmul.f32 -1.442695, %v3647_v49  ;;  %v2278_v49 = vmul.f32 -1.442695, %v3657_v56 }
 0x6ed   :  { %v1922_v54 = vmul.f32 %v3674_v20, %v1901_v33  ;;  %v2276_v56 = vmul.f32 -1.442695, %v3652_v53 }
 0x6ee   :  { %v1920_v27 = vmul.f32 %v3674_v20, %v1899_v23 }
 0x6ef   :  { %1943 = vrot.lane.b32.xlu0 %v1911_v26, %s2926_s11  ;;  %1855 = vrot.lane.b32.xlu1 %v2280_v41, %s2926_s11  ;;  %v1921_v26 = vmul.f32 %v3674_v20, %v1900_v15  ;;  %v2263_v41 = vmul.f32 -1.442695, %v3592_v21 }
 0x6f1   :  { %2783 = vpow2.f32 %v2263_v41 }
 0x6f3   :  { %1947 = vrot.lane.b32.xlu0 %v1913_v48, %s2926_s11  ;;  %1945 = vrot.lane.b32.xlu1 %v1912_v59, %s2926_s11  ;;  %v2266_v48 = vmul.f32 -1.442695, %v3595_v24  ;;  %v2267_v59 = vmul.f32 -1.442695, %v3608_v32 }
 0x6f5   :  { %2785 = vpow2.f32 %v2266_v48 }
 0x6f6   :  { %2787 = vpow2.f32 %v2264_v61 }
 0x6f7   :  { %1951 = vrot.lane.b32.xlu0 %v1915_v25, %s2926_s11  ;;  %1949 = vrot.lane.b32.xlu1 %v1914_v39, %s2926_s11  ;;  %2789 = vpow2.f32 %v2269_v1  ;;  %v1554_v25 = vadd.f32 1.0, %v2782_v18 }
 0x6f8   :  { %2791 = vpow2.f32 %v2267_v59 }
 0x6f9   :  { %2793 = vpow2.f32 %v2270_v30 }
 0x6fa   :  { %2795 = vpow2.f32 %v2268_v8 }
 0x6fb   :  { %1955 = vrot.lane.b32.xlu0 %v1917_v40, %s2926_s11  ;;  %1953 = vrot.lane.b32.xlu1 %v1916_v55, %s2926_s11  ;;  %2797 = vrcp.f32 %v1554_v25 }
 0x6fe   :  { %v2784_v21 = vpop.eup %2783 }
 0x6ff   :  { %1959 = vrot.lane.b32.xlu0 %v1919_v19, %s2926_s11  ;;  %1957 = vrot.lane.b32.xlu1 %v1918_v16, %s2926_s11  ;;  %v1552_v36 = vadd.f32 1.0, %v2784_v21 }
 0x701   :  { %2799 = vrcp.f32 %v1552_v36 }
 0x702   :  { %v2786_v24 = vpop.eup %2785  ;;  %2801 = vpow2.f32 %v2273_v28 }
 0x703   :  { %1963 = vrot.lane.b32.xlu0 %v1921_v26, %s2926_s11  ;;  %1961 = vrot.lane.b32.xlu1 %v1920_v27, %s2926_s11  ;;  %v2788_v45 = vpop.eup %2787  ;;  %v1555_v10 = vadd.f32 1.0, %v2786_v24  ;;  %v2275_v27 = vmul.f32 -1.442695, %v3643_v14 }
 0x704   :  { %v2790_v39 = vpop.eup %2789  ;;  %v1553_v32 = vadd.f32 1.0, %v2788_v45 }
 0x705   :  { %v2792_v4 = vpop.eup %2791  ;;  %2803 = vrcp.f32 %v1555_v10  ;;  %v1558_v60 = vadd.f32 1.0, %v2790_v39 }
 0x706   :  { %v2794_v12 = vpop.eup %2793  ;;  %2805 = vrcp.f32 %v1553_v32  ;;  %v1556_v40 = vadd.f32 1.0, %v2792_v4 }
 0x707   :  { %1965 = vrot.lane.b32.xlu1 %v1922_v54, %s2926_s11  ;;  %2807 = vpow2.f32 %v2271_v34  ;;  %v2796_v52 = vpop.eup %2795  ;;  %v1559_v55 = vadd.f32 1.0, %v2794_v12 }
 0x708   :  { %2809 = vrcp.f32 %v1558_v60  ;;  %v3751_v3 = vpop.eup %2797  ;;  %v1557_v57 = vadd.f32 1.0, %v2796_v52 }
 0x709   :  { %2811 = vrcp.f32 %v1556_v40 }
 0x70a   :  { %2813 = vpow2.f32 %v2274_v47 }
 0x70b   :  { %2815 = vrcp.f32 %v1559_v55 }
 0x70e   :  { %v3755_v6 = vpop.eup %2799 }
 0x70f   :  { %v2802_v15 = vpop.eup %2801 }
 0x710   :  { %v1562_v33 = vadd.f32 1.0, %v2802_v15 }
 0x712   :  { %v3757_v35 = vpop.eup %2803 }
 0x713   :  { %v3763_v31 = vpop.eup %2805 }
 0x714   :  { %v2808_v54 = vpop.eup %2807 }
 0x715   :  { %v3765_v38 = vpop.eup %2809  ;;  %v1560_v1 = vadd.f32 1.0, %v2808_v54 }
 0x716   :  { %v3770_v59 = vpop.eup %2811 }
 0x717   :  { %v2814_v30 = vpop.eup %2813 }
 0x718   :  { %v3772_v8 = vpop.eup %2815  ;;  %v1563_v45 = vadd.f32 1.0, %v2814_v30 }
 0x733   :  { %v1637_v58 = vpop.permute.xlu0 %1636 }
 0x734   :  { %v1682_v19 = vmul.f32 %v3751_v3, %v1637_v58 }
 0x736   :  { %2817 = vtanh.f32 %v1682_v19 }
 0x737   :  { %2819 = vrcp.f32 %v1557_v57  ;;  %v1633_v16 = vpop.permute.xlu0 %1632  ;;  %v1639_v26 = vpop.permute.xlu1 %1638 }
 0x738   :  { %2821 = vpow2.f32 %v2272_v29  ;;  %v1680_v23 = vmul.f32 %v3755_v6, %v1633_v16  ;;  %v1683_v5 = vmul.f32 %v3757_v35, %v1639_v26 }
 0x73a   :  { %2823 = vtanh.f32 %v1680_v23 }
 0x73b   :  { %2825 = vtanh.f32 %v1683_v5  ;;  %v1635_v48 = vpop.permute.xlu1 %1634 }
 0x73c   :  { %2827 = vpow2.f32 %v2277_v17  ;;  %v1645_v41 = vpop.permute.xlu0 %1644  ;;  %v1681_v14 = vmul.f32 %v3763_v31, %v1635_v48 }
 0x73d   :  { %2829 = vpow2.f32 %v2275_v27  ;;  %v1686_v61 = vmul.f32 %v3765_v38, %v1645_v41 }
 0x73e   :  { %2831 = vrcp.f32 %v1562_v33 }
 0x73f   :  { %2833 = vtanh.f32 %v1686_v61 }
 0x740   :  { %2835 = vtanh.f32 %v1681_v14  ;;  %v1641_v18 = vpop.permute.xlu0 %1640  ;;  %v1647_v25 = vpop.permute.xlu1 %1646 }
 0x741   :  { %2837 = vpow2.f32 %v2278_v49  ;;  %v1684_v21 = vmul.f32 %v3770_v59, %v1641_v18  ;;  %v1687_v24 = vmul.f32 %v3772_v8, %v1647_v25 }
 0x742   :  { %2839 = vrcp.f32 %v1560_v1 }
 0x743   :  { %v2818_v36 = vpop.eup %2817  ;;  %2841 = vtanh.f32 %v1684_v21 }
 0x744   :  { %v3777_v28 = vpop.eup %2819  ;;  %2843 = vtanh.f32 %v1687_v24  ;;  %1732 = vrot.lane.b32.xlu0 %v2818_v36, %s2926_s11  ;;  %v1643_v39 = vpop.permute.xlu1 %1642 }
 0x745   :  { %v2822_v10 = vpop.eup %2821  ;;  %2845 = vpow2.f32 %v2276_v56  ;;  %v1685_v32 = vmul.f32 %v3777_v28, %v1643_v39 }
 0x746   :  { %2847 = vrcp.f32 %v1563_v45  ;;  %v1561_v60 = vadd.f32 1.0, %v2822_v10 }
 0x747   :  { %v2824_v34 = vpop.eup %2823  ;;  %2849 = vtanh.f32 %v1685_v32  ;;  %v1803_v32 = vmax.f32 %v3550_v9, 0.0 }
 0x748   :  { %v2826_v4 = vpop.eup %2825  ;;  %1728 = vrot.lane.b32.xlu0 %v2824_v34, %s2926_s11  ;;  %2851 = vrcp.f32 %v1561_v60  ;;  %v1804_v60 = vmax.f32 %v3557_v44, 0.0 }
 0x749   :  { %v2828_v53 = vpop.eup %2827  ;;  %1734 = vrot.lane.b32.xlu1 %v2826_v4, %s2926_s11  ;;  %v1653_v52 = vpop.permute.xlu0 %1652  ;;  %v1801_v4 = vmax.f32 %v3542_v11, 0.0 }
 0x74a   :  { %v2830_v12 = vpop.eup %2829  ;;  %v1566_v57 = vadd.f32 1.0, %v2828_v53  ;;  %v1806_v53 = vmax.f32 %v3565_v50, 0.0 }
 0x74b   :  { %v3783_v40 = vpop.eup %2831  ;;  %v1564_v15 = vadd.f32 1.0, %v2830_v12 }
 0x74c   :  { %v2834_v47 = vpop.eup %2833  ;;  %v1690_v58 = vmul.f32 %v3783_v40, %v1653_v52  ;;  %v1807_v52 = vmax.f32 %v3568_v51, 0.0 }
 0x74d   :  { %v2836_v55 = vpop.eup %2835  ;;  %1740 = vrot.lane.b32.xlu0 %v2834_v47, %s2926_s11  ;;  %v1649_v23 = vpop.permute.xlu0 %1648  ;;  %v1805_v47 = vmax.f32 %v3560_v46, 0.0 }
 0x74e   :  { %v2838_v29 = vpop.eup %2837  ;;  %1730 = vrot.lane.b32.xlu1 %v2836_v55, %s2926_s11  ;;  %2853 = vtanh.f32 %v1690_v58  ;;  %v1655_v41 = vpop.permute.xlu1 %1654 }
 0x74f   :  { %v3788_v19 = vpop.eup %2839  ;;  %2855 = vrcp.f32 %v1566_v57  ;;  %v1567_v5 = vadd.f32 1.0, %v2838_v29 }
 0x750   :  { %v2842_v16 = vpop.eup %2841  ;;  %v1688_v26 = vmul.f32 %v3788_v19, %v1649_v23  ;;  %2857 = vrcp.f32 %v1564_v15 }
 0x751   :  { %v2844_v17 = vpop.eup %2843  ;;  %1736 = vrot.lane.b32.xlu0 %v2842_v16, %s2926_s11 }
 0x752   :  { %1742 = vrot.lane.b32.xlu1 %v2844_v17, %s2926_s11  ;;  %v2846_v27 = vpop.eup %2845  ;;  %2859 = vtanh.f32 %v1688_v26  ;;  %v1651_v14 = vpop.permute.xlu1 %1650  ;;  %v2921_v17 = vld [vmem:[%s4068_s1 + $0x60] sm:$0xff] }
 0x753   :  { %v3793_v33 = vpop.eup %2847  ;;  %v1565_v48 = vadd.f32 1.0, %v2846_v27  ;;  %2861 = vrcp.f32 %v1567_v5  ;;  %v1902_v23 = vmax.f32 %v2921_v17, 0.0  ;;  %v2922_v5 = vld [vmem:[%s4068_s1 + $0x70] sm:$0xff] }
 0x754   :  { %v2850_v54 = vpop.eup %2849  ;;  %v1691_v49 = vmul.f32 %v3793_v33, %v1655_v41 }
 0x755   :  { %v3797_v61 = vpop.eup %2851  ;;  %v1657_v30 = vpop.permute.xlu0 %1656  ;;  %v1923_v27 = vmul.f32 %v3674_v20, %v1902_v23 }
 0x756   :  { %1738 = vrot.lane.b32.xlu1 %v2850_v54, %s2926_s11  ;;  %2863 = vtanh.f32 %v1691_v49  ;;  %v1689_v1 = vmul.f32 %v3797_v61, %v1651_v14  ;;  %v1904_v54 = vmax.f32 %v2922_v5, 0.0 }
 0x757   :  { %2865 = vrcp.f32 %v1565_v48  ;;  %v2923_v48 = vld [vmem:[%s4068_s1 + $0x68] sm:$0xff] }
 0x758   :  { %2867 = vtanh.f32 %v1689_v1  ;;  %v1903_v49 = vmax.f32 %v2923_v48, 0.0  ;;  %v1925_v14 = vmul.f32 %v3674_v20, %v1904_v54  ;;  %v1792_v48 = vmax.f32 %v3503_v42, 0.0 }
 0x759   :  { %v1661_v25 = vpop.permute.xlu0 %1660  ;;  %v1659_v10 = vpop.permute.xlu1 %1658 }
 0x75b   :  { %v2854_v18 = vpop.eup %2853 }
 0x75c   :  { %1748 = vrot.lane.b32.xlu0 %v2854_v18, %s2926_s11  ;;  %v3801_v21 = vpop.eup %2855  ;;  %v2924_v18 = vld [vmem:[%s4068_s1 + $0x78] sm:$0xff] }
 0x75d   :  { %v1694_v56 = vmul.f32 %v3801_v21, %v1661_v25  ;;  %v3804_v24 = vpop.eup %2857  ;;  %v3807_v39 = vpop.permute.xlu0 %1814  ;;  %v1905_v25 = vmax.f32 %v2924_v18, 0.0 }
 0x75e   :  { %v1692_v45 = vmul.f32 %v3804_v24, %v1657_v30  ;;  %v1663_v55 = vpop.permute.xlu1 %1662  ;;  %v3819_v57 = vmul.f32 %v3807_v39, %v1803_v32  ;;  %v3824_v11 = vmul.f32 %v3807_v39, %v1801_v4  ;;  %v3827_v44 = vmul.f32 %v3807_v39, %v1804_v60 }
 0x75f   :  { %v2860_v36 = vpop.eup %2859  ;;  %2869 = vtanh.f32 %v1694_v56  ;;  %v3830_v50 = vmul.f32 %v3807_v39, %v1806_v53  ;;  %v3835_v51 = vmul.f32 %v3807_v39, %v1805_v47  ;;  %v3838_v58 = vmul.f32 %v3807_v39, %v1807_v52 }
 0x760   :  { %1744 = vrot.lane.b32.xlu0 %v2860_v36, %s2926_s11  ;;  %v3811_v34 = vpop.eup %2861  ;;  %2871 = vtanh.f32 %v1692_v45  ;;  %v1924_v30 = vmul.f32 %v3674_v20, %v1903_v49  ;;  %v1926_v56 = vmul.f32 %v3674_v20, %v1905_v25 }
 0x761   :  { %v1695_v9 = vmul.f32 %v3811_v34, %v1663_v55  ;;  %v1944_v45 = vpop.permute.xlu0 %1943 }
 0x762   :  { %v3866_v36 = vpop.permute.xlu1 %1855 }
 0x763   :  { %v2864_v12 = vpop.eup %2863  ;;  %2873 = vtanh.f32 %v1695_v9 }
 0x764   :  { %1750 = vrot.lane.b32.xlu1 %v2864_v12, %s2926_s11  ;;  %v3832_v46 = vpop.eup %2865 }
 0x765   :  { %v1693_v29 = vmul.f32 %v3832_v46, %v1659_v10  ;;  %v2868_v15 = vpop.eup %2867  ;;  %v1948_v32 = vpop.permute.xlu0 %1947 }
 0x766   :  { %v3868_v10 = vpop.permute.xlu1 %1945 }
 0x767   :  { %2875 = vtanh.f32 %v1693_v29 }
 0x768   :  { %1746 = vrot.lane.b32.xlu1 %v2868_v15, %s2926_s11 }
 0x769   :  { %v3870_v60 = vpop.permute.xlu0 %1951 }
 0x76a   :  { %v1950_v4 = vpop.permute.xlu1 %1949 }
 0x76c   :  { %v2870_v16 = vpop.eup %2869 }
 0x76d   :  { %1756 = vrot.lane.b32.xlu0 %v2870_v16, %s2926_s11  ;;  %v2872_v26 = vpop.eup %2871  ;;  %v1956_v12 = vpop.permute.xlu0 %1955  ;;  %v1794_v16 = vmax.f32 %v3511_v0, 0.0  ;;  %v1817_v0 = vmul.f32 %v3807_v39, %v1792_v48 }
 0x76e   :  { %v3872_v53 = vpop.permute.xlu1 %1953 }
 0x770   :  { %v2874_v41 = vpop.eup %2873 }
 0x771   :  { %1752 = vrot.lane.b32.xlu0 %v2872_v26, %s2926_s11  ;;  %1758 = vrot.lane.b32.xlu1 %v2874_v41, %s2926_s11  ;;  %v3876_v52 = vpop.permute.xlu0 %1959  ;;  %v1819_v26 = vmul.f32 %v3807_v39, %v1794_v16 }
 0x772   :  { %v3874_v47 = vpop.permute.xlu1 %1957 }
 0x774   :  { %v2876_v1 = vpop.eup %2875 }
 0x775   :  { %1967 = vrot.lane.b32.xlu0 %v1923_v27, %s2926_s11  ;;  %1754 = vrot.lane.b32.xlu1 %v2876_v1, %s2926_s11  ;;  %v3880_v20 = vpop.permute.xlu0 %1963  ;;  %v1795_v1 = vmax.f32 %v3514_v2, 0.0  ;;  %v1798_v2 = vmax.f32 %v3529_v37, 0.0 }
 0x776   :  { %v3878_v55 = vpop.permute.xlu1 %1961 }
 0x779   :  { %1971 = vrot.lane.b32.xlu0 %v1925_v14, %s2926_s11  ;;  %1969 = vrot.lane.b32.xlu1 %v1924_v30, %s2926_s11 }
 0x77a   :  { %v3882_v9 = vpop.permute.xlu1 %1965 }
 0x77d   :  { %1973 = vrot.lane.b32.xlu1 %v1926_v56, %s2926_s11  ;;  %v1820_v56 = vmul.f32 %v3807_v39, %v1795_v1  ;;  %v1799_v1 = vmax.f32 %v3532_v62, 0.0  ;;  %v1797_v62 = vmax.f32 %v3524_v7, 0.0 }
 0x7b6   :  { %v1733_v29 = vpop.permute.xlu0 %1732 }
 0x7b7   :  { %v1778_v15 = vmul.f32 %v3751_v3, %v1733_v29 }
 0x7b9   :  { %v1835_v17 = vmax.f32 %v1778_v15, 0.0 }
 0x7ba   :  { %v1729_v23 = vpop.permute.xlu0 %1728 }
 0x7bb   :  { %v1860_v27 = vmul.f32 %v3866_v36, %v1835_v17  ;;  %v1776_v5 = vmul.f32 %v3755_v6, %v1729_v23  ;;  %v1735_v54 = vpop.permute.xlu1 %1734  ;;  %v1793_v23 = vmax.f32 %v3506_v63, 0.0  ;;  %v1796_v63 = vmax.f32 %v3521_v22, 0.0 }
 0x7bc   :  { %v1779_v41 = vmul.f32 %v3757_v35, %v1735_v54 }
 0x7bd   :  { %v1876_v49 = vadd.f32 %v1860_v27, %v1819_v26  ;;  %v1833_v14 = vmax.f32 %v1776_v5, 0.0  ;;  %v1823_v5 = vmul.f32 %v3807_v39, %v1798_v2 }
 0x7be   :  { %v1836_v3 = vmax.f32 %v1779_v41, 0.0 }
 0x7bf   :  { %v1858_v30 = vmul.f32 %v3866_v36, %v1833_v14  ;;  %v1741_v18 = vpop.permute.xlu0 %1740  ;;  %v1993_v25 = vadd.f32 %v1948_v32, %v1876_v49 }
 0x7c0   :  { %v1861_v6 = vmul.f32 %v3866_v36, %v1836_v3  ;;  %v1782_v29 = vmul.f32 %v3765_v38, %v1741_v18  ;;  %v1731_v35 = vpop.permute.xlu1 %1730 }
 0x7c1   :  { %v1874_v15 = vadd.f32 %v1858_v30, %v1817_v0  ;;  %v1777_v42 = vmul.f32 %v3763_v31, %v1731_v35  ;;  %2027 = vrot.lane.b32.xlu0 %v1993_v25, %s2926_s11  ;;  %v1818_v31 = vmul.f32 %v3807_v39, %v1793_v23 }
 0x7c2   :  { %v1877_v16 = vadd.f32 %v1861_v6, %v1820_v56  ;;  %v1839_v17 = vmax.f32 %v1782_v29, 0.0 }
 0x7c3   :  { %v1834_v26 = vmax.f32 %v1777_v42, 0.0  ;;  %v1737_v32 = vpop.permute.xlu0 %1736  ;;  %v1991_v27 = vadd.f32 %v1944_v45, %v1874_v15 }
 0x7c4   :  { %v1864_v54 = vmul.f32 %v3866_v36, %v1839_v17  ;;  %v1780_v38 = vmul.f32 %v3770_v59, %v1737_v32  ;;  %v1743_v41 = vpop.permute.xlu1 %1742  ;;  %v1994_v48 = vadd.f32 %v1950_v4, %v1877_v16  ;;  %v1821_v4 = vmul.f32 %v3807_v39, %v1796_v63 }
 0x7c5   :  { %v1859_v49 = vmul.f32 %v3866_v36, %v1834_v26  ;;  %v1783_v37 = vmul.f32 %v3772_v8, %v1743_v41  ;;  %2023 = vrot.lane.b32.xlu0 %v1991_v27, %s2926_s11  ;;  %v1824_v8 = vmul.f32 %v3807_v39, %v1799_v1  ;;  %v1802_v17 = vmax.f32 %v3547_v13, 0.0 }
 0x7c6   :  { %v1880_v14 = vadd.f32 %v1864_v54, %v1823_v5  ;;  %v1837_v45 = vmax.f32 %v1780_v38, 0.0  ;;  %2029 = vrot.lane.b32.xlu1 %v1994_v48, %s2926_s11  ;;  %v1800_v5 = vmax.f32 %v3539_v43, 0.0 }
 0x7c7   :  { %v1875_v3 = vadd.f32 %v1859_v49, %v1818_v31  ;;  %v1840_v59 = vmax.f32 %v1783_v37, 0.0 }
 0x7c8   :  { %v1862_v0 = vmul.f32 %v3866_v36, %v1837_v45  ;;  %v1739_v30 = vpop.permute.xlu1 %1738  ;;  %v1997_v18 = vadd.f32 %v1956_v12, %v1880_v14  ;;  %v1822_v12 = vmul.f32 %v3807_v39, %v1797_v62 }
 0x7c9   :  { %v1865_v25 = vmul.f32 %v3866_v36, %v1840_v59  ;;  %v1781_v22 = vmul.f32 %v3777_v28, %v1739_v30  ;;  %v1992_v56 = vadd.f32 %v3868_v10, %v1875_v3 }
 0x7ca   :  { %v1878_v6 = vadd.f32 %v1862_v0, %v1821_v4  ;;  %2035 = vrot.lane.b32.xlu0 %v1997_v18, %s2926_s11 }
 0x7cb   :  { %v1881_v29 = vadd.f32 %v1865_v25, %v1824_v8  ;;  %v1838_v35 = vmax.f32 %v1781_v22, 0.0  ;;  %2025 = vrot.lane.b32.xlu1 %v1992_v56, %s2926_s11 }
 0x7cc   :  { %v1995_v15 = vadd.f32 %v3870_v60, %v1878_v6  ;;  %v1827_v60 = vmul.f32 %v3807_v39, %v1802_v17 }
 0x7cd   :  { %v1863_v42 = vmul.f32 %v3866_v36, %v1838_v35  ;;  %v1998_v2 = vadd.f32 %v3874_v47, %v1881_v29 }
 0x7ce   :  { %2031 = vrot.lane.b32.xlu0 %v1995_v15, %s2926_s11  ;;  %v1749_v28 = vpop.permute.xlu0 %1748 }
 0x7cf   :  { %v1879_v10 = vadd.f32 %v1863_v42, %v1822_v12  ;;  %2037 = vrot.lane.b32.xlu1 %v1998_v2, %s2926_s11  ;;  %v1786_v7 = vmul.f32 %v3783_v40, %v1749_v28 }
 0x7d1   :  { %v1996_v16 = vadd.f32 %v3872_v53, %v1879_v10  ;;  %v1843_v23 = vmax.f32 %v1786_v7, 0.0  ;;  %v1825_v53 = vmul.f32 %v3807_v39, %v1800_v5 }
 0x7d2   :  { %v1745_v47 = vpop.permute.xlu0 %1744 }
 0x7d3   :  { %2033 = vrot.lane.b32.xlu1 %v1996_v16, %s2926_s11  ;;  %v1868_v26 = vmul.f32 %v3866_v36, %v1843_v23  ;;  %v1784_v32 = vmul.f32 %v3788_v19, %v1745_v47 }
 0x7d5   :  { %v1884_v27 = vadd.f32 %v1868_v26, %v1827_v60  ;;  %v1841_v54 = vmax.f32 %v1784_v32, 0.0 }
 0x7d6   :  { %v1751_v38 = vpop.permute.xlu1 %1750 }
 0x7d7   :  { %v2001_v40 = vadd.f32 %v3880_v20, %v1884_v27  ;;  %v1866_v13 = vmul.f32 %v3866_v36, %v1841_v54  ;;  %v1787_v41 = vmul.f32 %v3793_v33, %v1751_v38 }
 0x7d9   :  { %2043 = vrot.lane.b32.xlu0 %v2001_v40, %s2926_s11  ;;  %v1882_v48 = vadd.f32 %v1866_v13, %v1825_v53  ;;  %v1844_v31 = vmax.f32 %v1787_v41, 0.0 }
 0x7da   :  { %v1747_v49 = vpop.permute.xlu1 %1746 }
 0x7db   :  { %v1999_v19 = vadd.f32 %v3876_v52, %v1882_v48  ;;  %v1869_v37 = vmul.f32 %v3866_v36, %v1844_v31  ;;  %v1785_v43 = vmul.f32 %v3797_v61, %v1747_v49 }
 0x7dd   :  { %v1885_v20 = vadd.f32 %v1869_v37, %v3819_v57  ;;  %v1842_v63 = vmax.f32 %v1785_v43, 0.0  ;;  %2039 = vrot.lane.b32.xlu0 %v1999_v19, %s2926_s11 }
 0x7df   :  { %v2002_v39 = vadd.f32 %v3882_v9, %v1885_v20  ;;  %v1867_v33 = vmul.f32 %v3866_v36, %v1842_v63  ;;  %v1757_v14 = vpop.permute.xlu0 %1756 }
 0x7e0   :  { %v1790_v52 = vmul.f32 %v3801_v21, %v1757_v14 }
 0x7e1   :  { %v1883_v45 = vadd.f32 %v1867_v33, %v3824_v11  ;;  %2045 = vrot.lane.b32.xlu1 %v2002_v39, %s2926_s11  ;;  %v3985_v39 = vld [vmem:[%s4070_s4 + $0xb] ss:$0 sm:$0xff] }
 0x7e2   :  { %v1847_v57 = vmax.f32 %v1790_v52, 0.0 }
 0x7e3   :  { %v2000_v1 = vadd.f32 %v3878_v55, %v1883_v45  ;;  %v1753_v3 = vpop.permute.xlu0 %1752  ;;  %v1759_v4 = vpop.permute.xlu1 %1758 }
 0x7e4   :  { %v1788_v61 = vmul.f32 %v3804_v24, %v1753_v3  ;;  %v1791_v30 = vmul.f32 %v3811_v34, %v1759_v4  ;;  %v1872_v11 = vmul.f32 %v3866_v36, %v1847_v57 }
 0x7e5   :  { %2041 = vrot.lane.b32.xlu1 %v2000_v1, %s2926_s11 }
 0x7e6   :  { %v1845_v59 = vmax.f32 %v1788_v61, 0.0  ;;  %v1848_v25 = vmax.f32 %v1791_v30, 0.0  ;;  %v1888_v56 = vadd.f32 %v1872_v11, %v3830_v50 }
 0x7e7   :  { %v1968_v9 = vpop.permute.xlu0 %1967  ;;  %v1755_v21 = vpop.permute.xlu1 %1754 }
 0x7e8   :  { %v1870_v0 = vmul.f32 %v3866_v36, %v1845_v59  ;;  %v1789_v55 = vmul.f32 %v3832_v46, %v1755_v21  ;;  %v1873_v34 = vmul.f32 %v3866_v36, %v1848_v25 }
 0x7ea   :  { %v1886_v18 = vadd.f32 %v1870_v0, %v3827_v44  ;;  %v1846_v24 = vmax.f32 %v1789_v55, 0.0  ;;  %v1889_v15 = vadd.f32 %v1873_v34, %v3838_v58 }
 0x7eb   :  { %v1972_v22 = vpop.permute.xlu0 %1971  ;;  %v1970_v6 = vpop.permute.xlu1 %1969 }
 0x7ec   :  { %v2003_v8 = vadd.f32 %v1968_v9, %v1886_v18  ;;  %v1871_v62 = vmul.f32 %v3866_v36, %v1846_v24  ;;  %v2005_v29 = vadd.f32 %v1972_v22, %v1888_v56 }
 0x7ee   :  { %2047 = vrot.lane.b32.xlu0 %v2003_v8, %s2926_s11  ;;  %v1887_v35 = vadd.f32 %v1871_v62, %v3835_v51 }
 0x7ef   :  { %v1974_v46 = vpop.permute.xlu1 %1973 }
 0x7f0   :  { %v2004_v44 = vadd.f32 %v1970_v6, %v1887_v35  ;;  %v2006_v12 = vadd.f32 %v1974_v46, %v1889_v15 }
 0x7f2   :  { %2051 = vrot.lane.b32.xlu0 %v2005_v29, %s2926_s11  ;;  %2049 = vrot.lane.b32.xlu1 %v2004_v44, %s2926_s11 }
 0x7f6   :  { %2053 = vrot.lane.b32.xlu1 %v2006_v12, %s2926_s11 }
 0x833   :  { %v2028_v50 = vpop.permute.xlu0 %2027 }
 0x834   :  { %v2077_v42 = vsel %vm77_vm0, %v2028_v50, 0.0 }
 0x835   :  { %2078 = vadd.xlane.f32.xlu0 %v2077_v42 }
 0x837   :  { %v2024_v2 = vpop.permute.xlu0 %2023 }
 0x838   :  { %v2071_v36 = vsel %vm77_vm0, %v2024_v2, 0.0  ;;  %v2030_v28 = vpop.permute.xlu1 %2029 }
 0x839   :  { %2072 = vadd.xlane.f32.xlu0 %v2071_v36  ;;  %v2080_v51 = vsel %vm77_vm0, %v2030_v28, 0.0 }
 0x83c   :  { %v2036_v10 = vpop.permute.xlu0 %2035 }
 0x83d   :  { %v2026_v7 = vpop.permute.xlu1 %2025  ;;  %2081 = vadd.xlane.f32.xlu0 %v2080_v51  ;;  %v2089_v17 = vsel %vm77_vm0, %v2036_v10, 0.0 }
 0x83e   :  { %v2074_v58 = vsel %vm77_vm0, %v2026_v7, 0.0 }
 0x83f   :  { %2075 = vadd.xlane.f32.xlu1 %v2074_v58 }
 0x840   :  { %v2032_v60 = vpop.permute.xlu0 %2031 }
 0x841   :  { %v2038_v16 = vpop.permute.xlu1 %2037  ;;  %v2083_v47 = vsel %vm77_vm0, %v2032_v60, 0.0 }
 0x842   :  { %v2092_v23 = vsel %vm77_vm0, %v2038_v16, 0.0 }
 0x843   :  { %2090 = vadd.xlane.f32.xlu1 %v2089_v17  ;;  %2093 = vadd.xlane.f32.xlu0 %v2092_v23 }
 0x845   :  { %v2034_v26 = vpop.permute.xlu1 %2033 }
 0x846   :  { %v2086_v32 = vsel %vm77_vm0, %v2034_v26, 0.0 }
 0x847   :  { %2084 = vadd.xlane.f32.xlu1 %v2083_v47  ;;  %2087 = vadd.xlane.f32.xlu0 %v2086_v32 }
 0x84b   :  { %v2044_v27 = vpop.permute.xlu0 %2043 }
 0x84c   :  { %v2101_v5 = vsel %vm77_vm0, %v2044_v27, 0.0 }
 0x84d   :  { %2102 = vadd.xlane.f32.xlu1 %v2101_v5 }
 0x84f   :  { %v2040_v54 = vpop.permute.xlu0 %2039 }
 0x850   :  { %v2095_v40 = vsel %vm77_vm0, %v2040_v54, 0.0 }
 0x851   :  { %2096 = vadd.xlane.f32.xlu1 %v2095_v40 }
 0x853   :  { %v2046_v38 = vpop.permute.xlu1 %2045 }
 0x854   :  { %v2104_v53 = vsel %vm77_vm0, %v2046_v38, 0.0 }
 0x855   :  { %2105 = vadd.xlane.f32.xlu0 %v2104_v53 }
 0x857   :  { %v2042_v13 = vpop.permute.xlu1 %2041 }
 0x858   :  { %v2098_v41 = vsel %vm77_vm0, %v2042_v13, 0.0 }
 0x859   :  { %2099 = vadd.xlane.f32.xlu0 %v2098_v41 }
 0x860   :  { %v2048_v48 = vpop.permute.xlu0 %2047 }
 0x861   :  { %v2107_v31 = vsel %vm77_vm0, %v2048_v48, 0.0 }
 0x862   :  { %2108 = vadd.xlane.f32.xlu1 %v2107_v31 }
 0x864   :  { %v2052_v49 = vpop.permute.xlu0 %2051  ;;  %v2050_v37 = vpop.permute.xlu1 %2049 }
 0x865   :  { %v2113_v19 = vsel %vm77_vm0, %v2052_v49, 0.0  ;;  %v2110_v43 = vsel %vm77_vm0, %v2050_v37, 0.0 }
 0x866   :  { %2114 = vadd.xlane.f32.xlu1 %v2113_v19  ;;  %2111 = vadd.xlane.f32.xlu0 %v2110_v43 }
 0x868   :  { %v2054_v20 = vpop.permute.xlu1 %2053 }
 0x869   :  { %v2116_v63 = vsel %vm77_vm0, %v2054_v20, 0.0 }
 0x86a   :  { %2117 = vadd.xlane.f32.xlu0 %v2116_v63 }
 0x8be   :  { %v2079_v33 = vpop.xlane.xlu0 %2078 }
 0x8bf   :  { %v2126_v14 = vadd.f32 %v3985_v39, %v2079_v33 }
 0x8c1   :  { %2877 = vtanh.f32 %v2126_v14 }
 0x8c2   :  { %v2073_v45 = vpop.xlane.xlu0 %2072 }
 0x8c3   :  { %v2124_v52 = vadd.f32 %v3985_v39, %v2073_v45 }
 0x8c5   :  { %2879 = vtanh.f32 %v2124_v52 }
 0x8c6   :  { %v2082_v1 = vpop.xlane.xlu0 %2081 }
 0x8c7   :  { %v2127_v3 = vadd.f32 %v3985_v39, %v2082_v1 }
 0x8c8   :  { %v2076_v61 = vpop.xlane.xlu1 %2075 }
 0x8c9   :  { %2881 = vtanh.f32 %v2127_v3  ;;  %v2125_v57 = vadd.f32 %v3985_v39, %v2076_v61 }
 0x8cb   :  { %2883 = vtanh.f32 %v2125_v57 }
 0x8cc   :  { %v2094_v59 = vpop.xlane.xlu0 %2093  ;;  %v2091_v4 = vpop.xlane.xlu1 %2090 }
 0x8cd   :  { %v2131_v9 = vadd.f32 %v3985_v39, %v2094_v59  ;;  %v2130_v0 = vadd.f32 %v3985_v39, %v2091_v4 }
 0x8ce   :  { %v2878_v30 = vpop.eup %2877 }
 0x8cf   :  { %2159 = vst.msk [vmem:[%s4072_s5 + $0x10] sm:$0xff] %vm2156_vm1, %v2878_v30  ;;  %2885 = vtanh.f32 %v2131_v9 }
 0x8d0   :  { %2887 = vtanh.f32 %v2130_v0  ;;  %v2088_v11 = vpop.xlane.xlu0 %2087  ;;  %v2085_v18 = vpop.xlane.xlu1 %2084 }
 0x8d1   :  { %v2129_v21 = vadd.f32 %v3985_v39, %v2088_v11  ;;  %v2128_v55 = vadd.f32 %v3985_v39, %v2085_v18 }
 0x8d2   :  { %v2880_v8 = vpop.eup %2879 }
 0x8d3   :  { %2157 = vst.msk [vmem:[%s4072_s5] sm:$0xff] %vm2156_vm1, %v2880_v8  ;;  %2889 = vtanh.f32 %v2129_v21 }
 0x8d4   :  { %2891 = vtanh.f32 %v2128_v55 }
 0x8d6   :  { %v2882_v25 = vpop.eup %2881  ;;  %v2103_v24 = vpop.xlane.xlu1 %2102 }
 0x8d7   :  { %2160 = vst.msk [vmem:[%s4072_s5 + $0x18] sm:$0xff] %vm2156_vm1, %v2882_v25  ;;  %v2134_v56 = vadd.f32 %v3985_v39, %v2103_v24 }
 0x8d8   :  { %v2884_v22 = vpop.eup %2883 }
 0x8d9   :  { %2158 = vst.msk [vmem:[%s4072_s5 + $0x8] sm:$0xff] %vm2156_vm1, %v2884_v22  ;;  %2893 = vtanh.f32 %v2134_v56 }
 0x8da   :  { %v2097_v62 = vpop.xlane.xlu1 %2096 }
 0x8db   :  { %v2132_v34 = vadd.f32 %v3985_v39, %v2097_v62 }
 0x8dc   :  { %v2886_v6 = vpop.eup %2885 }
 0x8dd   :  { %v2888_v29 = vpop.eup %2887  ;;  %2164 = vst.msk [vmem:[%s4072_s5 + $0x38] sm:$0xff] %vm2156_vm1, %v2886_v6  ;;  %2895 = vtanh.f32 %v2132_v34 }
 0x8de   :  { %2163 = vst.msk [vmem:[%s4072_s5 + $0x30] sm:$0xff] %vm2156_vm1, %v2888_v29  ;;  %v2106_v44 = vpop.xlane.xlu0 %2105 }
 0x8df   :  { %v2135_v15 = vadd.f32 %v3985_v39, %v2106_v44 }
 0x8e0   :  { %v2890_v35 = vpop.eup %2889 }
 0x8e1   :  { %v2892_v46 = vpop.eup %2891  ;;  %2162 = vst.msk [vmem:[%s4072_s5 + $0x28] sm:$0xff] %vm2156_vm1, %v2890_v35  ;;  %2897 = vtanh.f32 %v2135_v15 }
 0x8e2   :  { %2161 = vst.msk [vmem:[%s4072_s5 + $0x20] sm:$0xff] %vm2156_vm1, %v2892_v46  ;;  %v2100_v12 = vpop.xlane.xlu0 %2099 }
 0x8e3   :  { %v2133_v50 = vadd.f32 %v3985_v39, %v2100_v12 }
 0x8e5   :  { %2899 = vtanh.f32 %v2133_v50 }
 0x8e6   :  { %v2894_v42 = vpop.eup %2893 }
 0x8e7   :  { %2167 = vst.msk [vmem:[%s4072_s5 + $0x50] sm:$0xff] %vm2156_vm1, %v2894_v42 }
 0x8ea   :  { %v2896_v2 = vpop.eup %2895 }
 0x8eb   :  { %2165 = vst.msk [vmem:[%s4072_s5 + $0x40] sm:$0xff] %vm2156_vm1, %v2896_v2  ;;  %v2109_v36 = vpop.xlane.xlu1 %2108 }
 0x8ec   :  { %v2136_v28 = vadd.f32 %v3985_v39, %v2109_v36 }
 0x8ee   :  { %v2898_v51 = vpop.eup %2897  ;;  %2901 = vtanh.f32 %v2136_v28 }
 0x8ef   :  { %2168 = vst.msk [vmem:[%s4072_s5 + $0x58] sm:$0xff] %vm2156_vm1, %v2898_v51  ;;  %v2115_v10 = vpop.xlane.xlu1 %2114  ;;  %v2112_v16 = vpop.xlane.xlu0 %2111 }
 0x8f0   :  { %v2138_v7 = vadd.f32 %v3985_v39, %v2115_v10  ;;  %v2137_v17 = vadd.f32 %v3985_v39, %v2112_v16 }
 0x8f2   :  { %v2900_v58 = vpop.eup %2899  ;;  %2903 = vtanh.f32 %v2138_v7 }
 0x8f3   :  { %2166 = vst.msk [vmem:[%s4072_s5 + $0x48] sm:$0xff] %vm2156_vm1, %v2900_v58  ;;  %2905 = vtanh.f32 %v2137_v17  ;;  %v2118_v23 = vpop.xlane.xlu0 %2117 }
 0x8f4   :  { %v2139_v60 = vadd.f32 %v3985_v39, %v2118_v23 }
 0x8f6   :  { %2907 = vtanh.f32 %v2139_v60 }
 0x8fb   :  { %v2902_v26 = vpop.eup %2901 }
 0x8fc   :  { %2169 = vst.msk [vmem:[%s4072_s5 + $0x60] sm:$0xff] %vm2156_vm1, %v2902_v26 }
 0x8ff   :  { %v2904_v47 = vpop.eup %2903 }
 0x900   :  { %2171 = vst.msk [vmem:[%s4072_s5 + $0x70] sm:$0xff] %vm2156_vm1, %v2904_v47  ;;  %v2906_v32 = vpop.eup %2905 }
 0x901   :  { %2170 = vst.msk [vmem:[%s4072_s5 + $0x68] sm:$0xff] %vm2156_vm1, %v2906_v32 }
 0x903   :  { %v2908_v27 = vpop.eup %2907 }
 0x904   :  { %2172 = vst.msk [vmem:[%s4072_s5 + $0x78] sm:$0xff] %vm2156_vm1, %v2908_v27 }

</bundles_post_ra>
